<compile_context>
chip_gen: v6e
topology: v6e:2x2x1
jax: 0.10.0
libtpu: 0.0.40
codegen_flags: <defaults>
</compile_context>

<pallas_src>
import numpy as np
import jax
import jax.numpy as jnp
from jax.experimental import pallas as pl
from jax.experimental.pallas import tpu as pltpu

EPS = 1e-5


def _round_up(v, m):
    return -(-v // m) * m


# ----------------------------- Pallas kernel --------------------------------
def pointnetfeat_kernel(x_ref,
                        w0_ref, b0_ref,
                        w1_ref, b1_ref,
                        w2_ref, b2_ref,
                        we_ref, be_ref,
                        e1w_ref, e1b_ref,
                        e2w_ref, e2b_ref,
                        fw_ref, fb_ref,
                        out_ref,
                        acc_ref):
    k = pl.program_id(1)

    @pl.when(k == 0)
    def _init():
        acc_ref[...] = jnp.zeros_like(acc_ref)

    tb = x_ref.shape[0]

    def conv_relu(h, w_ref, b_ref):
        # One batched contraction for the whole tile: (tb, Cout, Cin) x (tb, Cin, nk).
        w = w_ref[...]                                        # (Cout, Cin) f32
        wb = jnp.broadcast_to(w, (tb,) + w.shape)             # tiny, once per grid step
        z = jnp.einsum("boc,bcn->bon", wb, h,
                       preferred_element_type=jnp.float32)
        return jnp.maximum(z + b_ref[...], 0.0)               # (Cout,1) broadcasts

    h = x_ref[...]                                            # (tb, C_in, nk) f32
    h = conv_relu(h, w0_ref, b0_ref)                          # (tb, C_in, nk)
    h = conv_relu(h, w1_ref, b1_ref)                          # (tb, 16,   nk)
    h = conv_relu(h, w2_ref, b2_ref)                          # (tb, 32,   nk)

    # conv_end (32 -> 1): VPU multiply + sublane reduce; result is (tb, nk) directly,
    # no scratch round-trip, no masked per-row stores.
    we = we_ref[...]                                          # (1, 32)
    g = jnp.sum(h * we[:, :, None], axis=1) + be_ref[...]     # (tb, nk) + (1,1)
    g = jnp.maximum(g, 0.0)

    # encoder1 partial product for this K tile: (tb, nk) @ (nk, 512), f32 accumulation.
    e1w = e1w_ref[...].astype(jnp.float32)                    # bf16 in HBM, f32 math
    acc_ref[...] += jnp.dot(g, e1w, preferred_element_type=jnp.float32)

    @pl.when(k == pl.num_programs(1) - 1)
    def _finalize():
        e1 = jnp.maximum(acc_ref[...] + e1b_ref[...], 0.0)    # (tb, 512)
        e2 = jnp.maximum(
            jnp.dot(e1, e2w_ref[...].astype(jnp.float32),
                    preferred_element_type=jnp.float32) + e2b_ref[...], 0.0)
        out_ref[...] = (jnp.dot(e2, fw_ref[...].astype(jnp.float32),
                                preferred_element_type=jnp.float32) + fb_ref[...])


def _full_spec(shape):
    nd = len(shape)
    return pl.BlockSpec(shape, lambda b, k, _nd=nd: (0,) * _nd)


def pointnetfeat_forward(x, folded, *, tile_b=None, tile_n=None, vmem_limit_bytes=None):
    """x: (B, C_in, N) float32. Returns (features (B, 32), None, None, None)."""
    B, C_in, N = x.shape
    n_gene = folded["n_gene"]
    assert N == n_gene, "module requires n_pts == n_gene (x.view(-1, n_gene))"

    H1 = folded["e1b"].shape[1]      # 512 (padded 500)
    H2 = folded["e2b"].shape[1]      # 384 (padded 300)
    OUT_PAD = folded["fb"].shape[1]  # 128 (padded 32)
    out_dim = folded["out_dim"]      # 32

    if tile_n is None:
        tile_n = min(2048, _round_up(N, 128))
    tile_n = _round_up(tile_n, 128)

    # Whole batch per tile when it fits -> e1w is streamed from HBM once.
    # (On v7x pass tile_b ~= round_up(B/2, 8) so the "parallel" axis splits across
    #  the two TensorCores.)
    if tile_b is None:
        tile_b = B if B <= 64 else 64
    B_pad = _round_up(B, tile_b)
    assert tile_b == B_pad or tile_b % 8 == 0, \
        "tile_b must equal the padded batch or be a multiple of 8"

    N_pad = _round_up(N, tile_n)
    if (B_pad, N_pad) != (B, N):
        x = jnp.pad(x, ((0, B_pad - B), (0, 0), (0, N_pad - N)))

    e1w = folded["e1w"]
    if e1w.shape[0] != N_pad:
        # Padded gene rows MUST be exactly zero: conv outputs at padded columns are
        # relu(folded_bias) != 0 and only zero e1w rows cancel their contribution.
        e1w = jnp.pad(e1w, ((0, N_pad - e1w.shape[0]), (0, 0)))

    weights = [
        folded["w0"], folded["b0"],
        folded["w1"], folded["b1"],
        folded["w2"], folded["b2"],
        folded["we"], folded["be"],
        e1w, folded["e1b"],
        folded["e2w"], folded["e2b"],
        folded["fw"], folded["fb"],
    ]

    grid = (B_pad // tile_b, N_pad // tile_n)

    in_specs = [pl.BlockSpec((tile_b, C_in, tile_n), lambda b, k: (b, 0, k))]   # x
    for w in weights[:8]:                                   # small conv weights: resident
        in_specs.append(_full_spec(w.shape))
    in_specs.append(pl.BlockSpec((tile_n, H1), lambda b, k: (k, 0)))            # e1w K-tiled
    for w in weights[9:]:                                   # encoder tails: resident
        in_specs.append(_full_spec(w.shape))

    if vmem_limit_bytes is None:
        # Footprint: double-buffered x and e1w blocks, conv intermediates (16- and
        # 32-channel activations dominate), accumulator, resident tail weights.
        w_bytes = jnp.dtype(folded["e1w"].dtype).itemsize
        est = int(2 * tile_b * max(8, C_in) * tile_n * 4
                  + 2 * tile_n * H1 * w_bytes
                  + tile_b * tile_n * (16 + 32 + 8) * 4
                  + tile_b * H1 * 4
                  + (H1 * H2 + H2 * OUT_PAD) * w_bytes
                  + 4 * 1024 * 1024)
        try:
            phys = pltpu.get_tpu_info().vmem_capacity_bytes  # 128 MiB v5e/v6e, 64 MiB v7x
        except Exception:
            phys = 64 * 1024 * 1024                          # conservative (v7x) fallback
        vmem_limit_bytes = max(32 * 1024 * 1024, min(int(phys * 0.8), est))

    out = pl.pallas_call(
        pointnetfeat_kernel,
        out_shape=jax.ShapeDtypeStruct((B_pad, OUT_PAD), jnp.float32),
        grid=grid,
        in_specs=in_specs,
        out_specs=pl.BlockSpec((tile_b, OUT_PAD), lambda b, k: (b, 0)),
        scratch_shapes=[pltpu.VMEM((tile_b, H1), jnp.float32)],   # encoder1 accumulator
        compiler_params=pltpu.CompilerParams(
            dimension_semantics=("parallel", "arbitrary"),
            vmem_limit_bytes=int(vmem_limit_bytes)),
    )(x, *weights)

    return out[:B, :out_dim], None, None, None


# --------------------------- parameter construction -------------------------
def _init_params(key, input_dim, n_gene):
    ks = iter(jax.random.split(key, 32))

    def rnd(shape, scale=0.1):
        return (scale * jax.random.normal(next(ks), shape)).astype(jnp.float32)

    def bn(c):
        gamma = 1.0 + rnd((c,), 0.05)
        beta = rnd((c,), 0.05)
        mean = rnd((c,), 0.05)
        var = 1.0 + jnp.abs(rnd((c,), 0.05))
        return gamma, beta, mean, var

    return {
        "conv0_w": rnd((input_dim, input_dim)), "conv0_b": rnd((input_dim,)),
        "conv1_w": rnd((16, input_dim)),        "conv1_b": rnd((16,)),
        "conv2_w": rnd((32, 16)),               "conv2_b": rnd((32,)),
        "conve_w": rnd((1, 32)),                "conve_b": rnd((1,)),
        "bn0": bn(input_dim), "bn1": bn(16), "bn2": bn(32), "bne": bn(1),
        "enc1_w": rnd((500, n_gene)), "enc1_b": rnd((500,)),
        "enc2_w": rnd((300, 500)),    "enc2_b": rnd((300,)),
        "fc1_w": rnd((32, 300)),      "fc1_b": rnd((32,)),
    }


def _fold_conv_bn(W, b, bn_params):
    gamma, beta, mean, var = bn_params
    scale = gamma / jnp.sqrt(var + EPS)          # (C_out,)
    Wf = W * scale[:, None]                      # (C_out, C_in)
    bf = scale * (b - mean) + beta               # (C_out,)
    return Wf.astype(jnp.float32), bf[:, None].astype(jnp.float32)


def _pad_to(a, shape):
    return jnp.pad(a, [(0, s - d) for d, s in zip(a.shape, shape)])


def _fold_params(p, weight_dtype=jnp.bfloat16):
    """Fold BN into convs; pad encoder dims to lane multiples; cast the three big
    encoder matrices to `weight_dtype` (bf16 default; f32 accumulation in-kernel)."""
    w0, b0 = _fold_conv_bn(p["conv0_w"], p["conv0_b"], p["bn0"])
    w1, b1 = _fold_conv_bn(p["conv1_w"], p["conv1_b"], p["bn1"])
    w2, b2 = _fold_conv_bn(p["conv2_w"], p["conv2_b"], p["bn2"])
    we, be = _fold_conv_bn(p["conve_w"], p["conve_b"], p["bne"])

    n_gene = p["enc1_w"].shape[1]
    h1 = _round_up(p["enc1_w"].shape[0], 128)   # 500 -> 512
    h2 = _round_up(p["enc2_w"].shape[0], 128)   # 300 -> 384
    out_dim = p["fc1_w"].shape[0]               # 32
    out_pad = _round_up(out_dim, 128)           # 32 -> 128 (lane-dense store)

    return {
        "w0": w0, "b0": b0, "w1": w1, "b1": b1, "w2": w2, "b2": b2,
        "we": we, "be": be,
        "e1w": _pad_to(p["enc1_w"].T, (n_gene, h1)).astype(weight_dtype),
        "e1b": _pad_to(p["enc1_b"][None, :], (1, h1)),
        "e2w": _pad_to(p["enc2_w"].T, (h1, h2)).astype(weight_dtype),
        "e2b": _pad_to(p["enc2_b"][None, :], (1, h2)),
        "fw":  _pad_to(p["fc1_w"].T, (h2, out_pad)).astype(weight_dtype),
        "fb":  _pad_to(p["fc1_b"][None, :], (1, out_pad)),
        "out_dim": out_dim, "n_gene": n_gene,
    }


# ------------------------------ pure-JAX references --------------------------
def _ref_forward(x, p):
    """Original (unfolded, full f32) semantics of the PyTorch module."""
    def bn(h, bn_params):
        gamma, beta, mean, var = bn_params
        return (gamma[None, :, None] * (h - mean[None, :, None])
                / jnp.sqrt(var[None, :, None] + EPS) + beta[None, :, None])

    def conv(h, W, b):
        return jnp.einsum("oc,bcn->bon", W, h) + b[None, :, None]

    h = jax.nn.relu(bn(conv(x, p["conv0_w"], p["conv0_b"]), p["bn0"]))
    h = jax.nn.relu(bn(conv(h, p["conv1_w"], p["conv1_b"]), p["bn1"]))
    h = jax.nn.relu(bn(conv(h, p["conv2_w"], p["conv2_b"]), p["bn2"]))
    h = jax.nn.relu(bn(conv(h, p["conve_w"], p["conve_b"]), p["bne"]))
    g = h.reshape(h.shape[0], -1)                       # (B, n_gene)
    e1 = jax.nn.relu(g @ p["enc1_w"].T + p["enc1_b"])
    e2 = jax.nn.relu(e1 @ p["enc2_w"].T + p["enc2_b"])
    return e2 @ p["fc1_w"].T + p["fc1_b"]


def _ref_from_folded(x, folded):
    """Same math as the kernel (folded BN, padded dims, weight_dtype-rounded encoder
    weights, f32 accumulation) in plain JAX — validates the kernel tightly."""
    def conv(h, w, b):
        return jnp.maximum(jnp.einsum("oc,bcn->bon", w, h) + b[None, :, :], 0.0)

    h = conv(x, folded["w0"], folded["b0"])
    h = conv(h, folded["w1"], folded["b1"])
    h = conv(h, folded["w2"], folded["b2"])
    g = jnp.maximum(jnp.einsum("oc,bcn->bon", folded["we"], h)
                    + folded["be"][None, :, :], 0.0)[:, 0, :]        # (B, n_gene)
    e1 = jnp.maximum(g @ folded["e1w"].astype(jnp.float32) + folded["e1b"], 0.0)
    e2 = jnp.maximum(e1 @ folded["e2w"].astype(jnp.float32) + folded["e2b"], 0.0)
    out = e2 @ folded["fw"].astype(jnp.float32) + folded["fb"]
    return out[:, :folded["out_dim"]]


# ----------------------------------- main ------------------------------------
if __name__ == "__main__":
    # small shapes; n_pts == n_gene as required by the module's x.view(-1, n_gene)
    B, INPUT_DIM, N_GENE = 4, 4, 256

    key = jax.random.PRNGKey(0)
    k_params, k_x = jax.random.split(key)
    params = _init_params(k_params, INPUT_DIM, N_GENE)
    x = jax.random.normal(k_x, (B, INPUT_DIM, N_GENE), dtype=jnp.float32)

    # 1) f32 weight path vs. the original (unfolded) module semantics — exact check.
    #    tile_n=128 -> 2 K-tiles, exercising the encoder1 accumulator path.
    folded_f32 = _fold_params(params, weight_dtype=jnp.float32)
    out32, trans, trans_feat, norm_n = pointnetfeat_forward(x, folded_f32, tile_n=128)
    out32 = jax.block_until_ready(out32)
    ref32 = _ref_forward(x, params)
    np.testing.assert_allclose(np.asarray(out32), np.asarray(ref32), rtol=1e-4, atol=1e-4)

    # 2) bf16 weight path (perf default) vs. a reference using the identical
    #    bf16-rounded weights with f32 accumulation — tight check of the kernel.
    folded_bf16 = _fold_params(params)                      # bfloat16 encoder weights
    out16, *_ = pointnetfeat_forward(x, folded_bf16, tile_n=128)
    out16 = jax.block_until_ready(out16)
    ref16 = _ref_from_folded(x, folded_bf16)
    np.testing.assert_allclose(np.asarray(out16), np.asarray(ref16), rtol=1e-4, atol=1e-4)

    assert out32.shape == (B, 32) and out16.shape == (B, 32)
    assert trans is None and trans_feat is None and norm_n is None
    print("KERNEL_OK")
</pallas_src>

<mosaic_0001>
module attributes {stable_mosaic.version = 11 : i64} {
  func.func @pointnetfeat_kernel(%arg0: i32, %arg1: i32, %arg2: memref<4x4x128xf32, #tpu.memory_space<vmem>>, %arg3: memref<4x4xf32, #tpu.memory_space<vmem>>, %arg4: memref<4x1xf32, #tpu.memory_space<vmem>>, %arg5: memref<16x4xf32, #tpu.memory_space<vmem>>, %arg6: memref<16x1xf32, #tpu.memory_space<vmem>>, %arg7: memref<32x16xf32, #tpu.memory_space<vmem>>, %arg8: memref<32x1xf32, #tpu.memory_space<vmem>>, %arg9: memref<1x32xf32, #tpu.memory_space<vmem>>, %arg10: memref<1x1xf32, #tpu.memory_space<vmem>>, %arg11: memref<128x512xf32, #tpu.memory_space<vmem>>, %arg12: memref<1x512xf32, #tpu.memory_space<vmem>>, %arg13: memref<512x384xf32, #tpu.memory_space<vmem>>, %arg14: memref<1x384xf32, #tpu.memory_space<vmem>>, %arg15: memref<384x128xf32, #tpu.memory_space<vmem>>, %arg16: memref<1x128xf32, #tpu.memory_space<vmem>>, %arg17: memref<4x128xf32, #tpu.memory_space<vmem>>, %arg18: memref<4x512xf32, #tpu.memory_space<vmem>>) attributes {dimension_semantics = [#tpu.dimension_semantics<parallel>, #tpu.dimension_semantics<arbitrary>], iteration_bounds = array<i64: 1, 2>, scalar_prefetch = 0 : i64, scratch_operands = 1 : i64, tpu.core_type = #tpu.core_type<tc>, window_params = [{transform_indices = @transform_0, window_bounds = array<i64: 4, 4, 128>}, {pipeline_mode = #tpu.pipeline_mode<synchronous>, transform_indices = @transform_1, window_bounds = array<i64: 4, 4>}, {pipeline_mode = #tpu.pipeline_mode<synchronous>, transform_indices = @transform_2, window_bounds = array<i64: 4, 1>}, {pipeline_mode = #tpu.pipeline_mode<synchronous>, transform_indices = @transform_3, window_bounds = array<i64: 16, 4>}, {pipeline_mode = #tpu.pipeline_mode<synchronous>, transform_indices = @transform_4, window_bounds = array<i64: 16, 1>}, {pipeline_mode = #tpu.pipeline_mode<synchronous>, transform_indices = @transform_5, window_bounds = array<i64: 32, 16>}, {pipeline_mode = #tpu.pipeline_mode<synchronous>, transform_indices = @transform_6, window_bounds = array<i64: 32, 1>}, {pipeline_mode = #tpu.pipeline_mode<synchronous>, transform_indices = @transform_7, window_bounds = array<i64: 1, 32>}, {pipeline_mode = #tpu.pipeline_mode<synchronous>, transform_indices = @transform_8, window_bounds = array<i64: 1, 1>}, {transform_indices = @transform_9, window_bounds = array<i64: 128, 512>}, {pipeline_mode = #tpu.pipeline_mode<synchronous>, transform_indices = @transform_10, window_bounds = array<i64: 1, 512>}, {pipeline_mode = #tpu.pipeline_mode<synchronous>, transform_indices = @transform_11, window_bounds = array<i64: 512, 384>}, {pipeline_mode = #tpu.pipeline_mode<synchronous>, transform_indices = @transform_12, window_bounds = array<i64: 1, 384>}, {pipeline_mode = #tpu.pipeline_mode<synchronous>, transform_indices = @transform_13, window_bounds = array<i64: 384, 128>}, {pipeline_mode = #tpu.pipeline_mode<synchronous>, transform_indices = @transform_14, window_bounds = array<i64: 1, 128>}, {transform_indices = @transform_15, window_bounds = array<i64: 4, 128>}]} {
    %c0_i32 = arith.constant 0 : i32
    %0 = arith.cmpi eq, %arg1, %c0_i32 : i32
    %1 = arith.extui %0 : i1 to i32
    %c0_i32_0 = arith.constant 0 : i32
    %2 = arith.cmpi ne, %1, %c0_i32_0 : i32
    scf.if %2 {
      %cst_34 = arith.constant 0.000000e+00 : f32
      %52 = vector.broadcast %cst_34 : f32 to vector<4x512xf32>
      %c0_35 = arith.constant 0 : index
      %c0_36 = arith.constant 0 : index
      %53 = vector.load %arg18[%c0_35, %c0_36] : memref<4x512xf32, #tpu.memory_space<vmem>>, vector<4x512xf32>
      tpu.vector_store %arg18[%c0_35, %c0_36], %52 {strides = array<i32>} : memref<4x512xf32, #tpu.memory_space<vmem>>, vector<4x512xf32>,
    } else {
    }
    %c0 = arith.constant 0 : index
    %c0_1 = arith.constant 0 : index
    %c0_2 = arith.constant 0 : index
    %3 = vector.load %arg2[%c0, %c0_1, %c0_2] : memref<4x4x128xf32, #tpu.memory_space<vmem>>, vector<4x4x128xf32>
    %c0_3 = arith.constant 0 : index
    %c0_4 = arith.constant 0 : index
    %4 = vector.load %arg3[%c0_3, %c0_4] : memref<4x4xf32, #tpu.memory_space<vmem>>, vector<4x4xf32>
    %5 = vector.shape_cast %4 : vector<4x4xf32> to vector<1x4x4xf32>
    %6 = vector.broadcast %5 : vector<1x4x4xf32> to vector<4x4x4xf32>
    "tpu.trace_start"() <{level = 10 : i32, message = "boc,bcn->bon"}> : () -> ()
    %cst = arith.constant dense<0.000000e+00> : vector<4x4x128xf32>
    %7 = tpu.matmul %6, %3, %cst {dimension_numbers = #tpu.dot_dimension_numbers<[2], [1], [1], [2], [0, 0, 0, 1, 1, 2], [0], [0]>} : vector<4x4x4xf32>, vector<4x4x128xf32>, vector<4x4x128xf32> -> vector<4x4x128xf32>
    "tpu.trace_stop"() : () -> ()
    %c0_5 = arith.constant 0 : index
    %c0_6 = arith.constant 0 : index
    %8 = vector.load %arg4[%c0_5, %c0_6] : memref<4x1xf32, #tpu.memory_space<vmem>>, vector<4x1xf32>
    %9 = vector.shape_cast %8 : vector<4x1xf32> to vector<1x4x1xf32>
    %10 = vector.broadcast %9 : vector<1x4x1xf32> to vector<4x4x128xf32>
    %11 = arith.addf %7, %10 : vector<4x4x128xf32>
    %cst_7 = arith.constant 0.000000e+00 : f32
    %12 = vector.broadcast %cst_7 : f32 to vector<4x4x128xf32>
    %13 = arith.maximumf %11, %12 : vector<4x4x128xf32>
    %c0_8 = arith.constant 0 : index
    %c0_9 = arith.constant 0 : index
    %14 = vector.load %arg5[%c0_8, %c0_9] : memref<16x4xf32, #tpu.memory_space<vmem>>, vector<16x4xf32>
    %15 = vector.shape_cast %14 : vector<16x4xf32> to vector<1x16x4xf32>
    %16 = vector.broadcast %15 : vector<1x16x4xf32> to vector<4x16x4xf32>
    "tpu.trace_start"() <{level = 10 : i32, message = "boc,bcn->bon"}> : () -> ()
    %cst_10 = arith.constant dense<0.000000e+00> : vector<4x16x128xf32>
    %17 = tpu.matmul %16, %13, %cst_10 {dimension_numbers = #tpu.dot_dimension_numbers<[2], [1], [1], [2], [0, 0, 0, 1, 1, 2], [0], [0]>} : vector<4x16x4xf32>, vector<4x4x128xf32>, vector<4x16x128xf32> -> vector<4x16x128xf32>
    "tpu.trace_stop"() : () -> ()
    %c0_11 = arith.constant 0 : index
    %c0_12 = arith.constant 0 : index
    %18 = vector.load %arg6[%c0_11, %c0_12] : memref<16x1xf32, #tpu.memory_space<vmem>>, vector<16x1xf32>
    %19 = vector.shape_cast %18 : vector<16x1xf32> to vector<1x16x1xf32>
    %20 = vector.broadcast %19 : vector<1x16x1xf32> to vector<4x16x128xf32>
    %21 = arith.addf %17, %20 : vector<4x16x128xf32>
    %cst_13 = arith.constant 0.000000e+00 : f32
    %22 = vector.broadcast %cst_13 : f32 to vector<4x16x128xf32>
    %23 = arith.maximumf %21, %22 : vector<4x16x128xf32>
    %c0_14 = arith.constant 0 : index
    %c0_15 = arith.constant 0 : index
    %24 = vector.load %arg7[%c0_14, %c0_15] : memref<32x16xf32, #tpu.memory_space<vmem>>, vector<32x16xf32>
    %25 = vector.shape_cast %24 : vector<32x16xf32> to vector<1x32x16xf32>
    %26 = vector.broadcast %25 : vector<1x32x16xf32> to vector<4x32x16xf32>
    "tpu.trace_start"() <{level = 10 : i32, message = "boc,bcn->bon"}> : () -> ()
    %cst_16 = arith.constant dense<0.000000e+00> : vector<4x32x128xf32>
    %27 = tpu.matmul %26, %23, %cst_16 {dimension_numbers = #tpu.dot_dimension_numbers<[2], [1], [1], [2], [0, 0, 0, 1, 1, 2], [0], [0]>} : vector<4x32x16xf32>, vector<4x16x128xf32>, vector<4x32x128xf32> -> vector<4x32x128xf32>
    "tpu.trace_stop"() : () -> ()
    %c0_17 = arith.constant 0 : index
    %c0_18 = arith.constant 0 : index
    %28 = vector.load %arg8[%c0_17, %c0_18] : memref<32x1xf32, #tpu.memory_space<vmem>>, vector<32x1xf32>
    %29 = vector.shape_cast %28 : vector<32x1xf32> to vector<1x32x1xf32>
    %30 = vector.broadcast %29 : vector<1x32x1xf32> to vector<4x32x128xf32>
    %31 = arith.addf %27, %30 : vector<4x32x128xf32>
    %cst_19 = arith.constant 0.000000e+00 : f32
    %32 = vector.broadcast %cst_19 : f32 to vector<4x32x128xf32>
    %33 = arith.maximumf %31, %32 : vector<4x32x128xf32>
    %c0_20 = arith.constant 0 : index
    %c0_21 = arith.constant 0 : index
    %34 = vector.load %arg9[%c0_20, %c0_21] : memref<1x32xf32, #tpu.memory_space<vmem>>, vector<1x32xf32>
    %35 = vector.shape_cast %34 : vector<1x32xf32> to vector<1x32x1xf32>
    %36 = vector.broadcast %35 : vector<1x32x1xf32> to vector<4x32x128xf32>
    %37 = arith.mulf %33, %36 : vector<4x32x128xf32>
    %cst_22 = arith.constant dense<0.000000e+00> : vector<4x128xf32>
    %38 = vector.multi_reduction <add>, %37, %cst_22 [1] : vector<4x32x128xf32> to vector<4x128xf32>
    %c0_23 = arith.constant 0 : index
    %c0_24 = arith.constant 0 : index
    %39 = vector.load %arg10[%c0_23, %c0_24] : memref<1x1xf32, #tpu.memory_space<vmem>>, vector<1x1xf32>
    %40 = vector.broadcast %39 : vector<1x1xf32> to vector<4x128xf32>
    %41 = arith.addf %38, %40 : vector<4x128xf32>
    %cst_25 = arith.constant 0.000000e+00 : f32
    %42 = vector.broadcast %cst_25 : f32 to vector<4x128xf32>
    %43 = arith.maximumf %41, %42 : vector<4x128xf32>
    %c0_26 = arith.constant 0 : index
    %c0_27 = arith.constant 0 : index
    %44 = vector.load %arg11[%c0_26, %c0_27] : memref<128x512xf32, #tpu.memory_space<vmem>>, vector<128x512xf32>
    %c0_28 = arith.constant 0 : index
    %c0_29 = arith.constant 0 : index
    %45 = vector.load %arg18[%c0_28, %c0_29] : memref<4x512xf32, #tpu.memory_space<vmem>>, vector<4x512xf32>
    %cst_30 = arith.constant dense<0.000000e+00> : vector<4x512xf32>
    %46 = tpu.matmul %43, %44, %cst_30 {dimension_numbers = #tpu.dot_dimension_numbers<[1], [0], [0], [1], [0, 0, 1, 1], [], []>} : vector<4x128xf32>, vector<128x512xf32>, vector<4x512xf32> -> vector<4x512xf32>
    %47 = arith.addf %45, %46 : vector<4x512xf32>
    %c0_31 = arith.constant 0 : index
    %c0_32 = arith.constant 0 : index
    %48 = vector.load %arg18[%c0_31, %c0_32] : memref<4x512xf32, #tpu.memory_space<vmem>>, vector<4x512xf32>
    tpu.vector_store %arg18[%c0_31, %c0_32], %47 {strides = array<i32>} : memref<4x512xf32, #tpu.memory_space<vmem>>, vector<4x512xf32>,
    %c1_i32 = arith.constant 1 : i32
    %49 = arith.cmpi eq, %arg1, %c1_i32 : i32
    %50 = arith.extui %49 : i1 to i32
    %c0_i32_33 = arith.constant 0 : i32
    %51 = arith.cmpi ne, %50, %c0_i32_33 : i32
    scf.if %51 {
      %c0_34 = arith.constant 0 : index
      %c0_35 = arith.constant 0 : index
      %52 = vector.load %arg18[%c0_34, %c0_35] : memref<4x512xf32, #tpu.memory_space<vmem>>, vector<4x512xf32>
      %c0_36 = arith.constant 0 : index
      %c0_37 = arith.constant 0 : index
      %53 = vector.load %arg12[%c0_36, %c0_37] : memref<1x512xf32, #tpu.memory_space<vmem>>, vector<1x512xf32>
      %54 = vector.broadcast %53 : vector<1x512xf32> to vector<4x512xf32>
      %55 = arith.addf %52, %54 : vector<4x512xf32>
      %cst_38 = arith.constant 0.000000e+00 : f32
      %56 = vector.broadcast %cst_38 : f32 to vector<4x512xf32>
      %57 = arith.maximumf %55, %56 : vector<4x512xf32>
      %c0_39 = arith.constant 0 : index
      %c0_40 = arith.constant 0 : index
      %58 = vector.load %arg13[%c0_39, %c0_40] : memref<512x384xf32, #tpu.memory_space<vmem>>, vector<512x384xf32>
      %cst_41 = arith.constant dense<0.000000e+00> : vector<4x384xf32>
      %59 = tpu.matmul %57, %58, %cst_41 {dimension_numbers = #tpu.dot_dimension_numbers<[1], [0], [0], [1], [0, 0, 1, 1], [], []>} : vector<4x512xf32>, vector<512x384xf32>, vector<4x384xf32> -> vector<4x384xf32>
      %c0_42 = arith.constant 0 : index
      %c0_43 = arith.constant 0 : index
      %60 = vector.load %arg14[%c0_42, %c0_43] : memref<1x384xf32, #tpu.memory_space<vmem>>, vector<1x384xf32>
      %61 = vector.broadcast %60 : vector<1x384xf32> to vector<4x384xf32>
      %62 = arith.addf %59, %61 : vector<4x384xf32>
      %cst_44 = arith.constant 0.000000e+00 : f32
      %63 = vector.broadcast %cst_44 : f32 to vector<4x384xf32>
      %64 = arith.maximumf %62, %63 : vector<4x384xf32>
      %c0_45 = arith.constant 0 : index
      %c0_46 = arith.constant 0 : index
      %65 = vector.load %arg15[%c0_45, %c0_46] : memref<384x128xf32, #tpu.memory_space<vmem>>, vector<384x128xf32>
      %cst_47 = arith.constant dense<0.000000e+00> : vector<4x128xf32>
      %66 = tpu.matmul %64, %65, %cst_47 {dimension_numbers = #tpu.dot_dimension_numbers<[1], [0], [0], [1], [0, 0, 1, 1], [], []>} : vector<4x384xf32>, vector<384x128xf32>, vector<4x128xf32> -> vector<4x128xf32>
      %c0_48 = arith.constant 0 : index
      %c0_49 = arith.constant 0 : index
      %67 = vector.load %arg16[%c0_48, %c0_49] : memref<1x128xf32, #tpu.memory_space<vmem>>, vector<1x128xf32>
      %68 = vector.broadcast %67 : vector<1x128xf32> to vector<4x128xf32>
      %69 = arith.addf %66, %68 : vector<4x128xf32>
      %c0_50 = arith.constant 0 : index
      %c0_51 = arith.constant 0 : index
      %70 = vector.load %arg17[%c0_50, %c0_51] : memref<4x128xf32, #tpu.memory_space<vmem>>, vector<4x128xf32>
      tpu.vector_store %arg17[%c0_50, %c0_51], %69 {strides = array<i32>} : memref<4x128xf32, #tpu.memory_space<vmem>>, vector<4x128xf32>,
    } else {
    }
    return
  }
  func.func @transform_0(%arg0: i32, %arg1: i32) -> (i32, i32, i32) {
    %c0_i32 = arith.constant 0 : i32
    %c0_i32_0 = arith.constant 0 : i32
    return %arg0, %c0_i32, %arg1 : i32, i32, i32
  }
  func.func @transform_1(%arg0: i32, %arg1: i32) -> (i32, i32) {
    %c0_i32 = arith.constant 0 : i32
    %c0_i32_0 = arith.constant 0 : i32
    %c0_i32_1 = arith.constant 0 : i32
    return %c0_i32, %c0_i32_0 : i32, i32
  }
  func.func @transform_2(%arg0: i32, %arg1: i32) -> (i32, i32) {
    %c0_i32 = arith.constant 0 : i32
    %c0_i32_0 = arith.constant 0 : i32
    %c0_i32_1 = arith.constant 0 : i32
    return %c0_i32, %c0_i32_0 : i32, i32
  }
  func.func @transform_3(%arg0: i32, %arg1: i32) -> (i32, i32) {
    %c0_i32 = arith.constant 0 : i32
    %c0_i32_0 = arith.constant 0 : i32
    %c0_i32_1 = arith.constant 0 : i32
    return %c0_i32, %c0_i32_0 : i32, i32
  }
  func.func @transform_4(%arg0: i32, %arg1: i32) -> (i32, i32) {
    %c0_i32 = arith.constant 0 : i32
    %c0_i32_0 = arith.constant 0 : i32
    %c0_i32_1 = arith.constant 0 : i32
    return %c0_i32, %c0_i32_0 : i32, i32
  }
  func.func @transform_5(%arg0: i32, %arg1: i32) -> (i32, i32) {
    %c0_i32 = arith.constant 0 : i32
    %c0_i32_0 = arith.constant 0 : i32
    %c0_i32_1 = arith.constant 0 : i32
    return %c0_i32, %c0_i32_0 : i32, i32
  }
  func.func @transform_6(%arg0: i32, %arg1: i32) -> (i32, i32) {
    %c0_i32 = arith.constant 0 : i32
    %c0_i32_0 = arith.constant 0 : i32
    %c0_i32_1 = arith.constant 0 : i32
    return %c0_i32, %c0_i32_0 : i32, i32
  }
  func.func @transform_7(%arg0: i32, %arg1: i32) -> (i32, i32) {
    %c0_i32 = arith.constant 0 : i32
    %c0_i32_0 = arith.constant 0 : i32
    %c0_i32_1 = arith.constant 0 : i32
    return %c0_i32, %c0_i32_0 : i32, i32
  }
  func.func @transform_8(%arg0: i32, %arg1: i32) -> (i32, i32) {
    %c0_i32 = arith.constant 0 : i32
    %c0_i32_0 = arith.constant 0 : i32
    %c0_i32_1 = arith.constant 0 : i32
    return %c0_i32, %c0_i32_0 : i32, i32
  }
  func.func @transform_9(%arg0: i32, %arg1: i32) -> (i32, i32) {
    %c0_i32 = arith.constant 0 : i32
    %c0_i32_0 = arith.constant 0 : i32
    return %arg1, %c0_i32 : i32, i32
  }
  func.func @transform_10(%arg0: i32, %arg1: i32) -> (i32, i32) {
    %c0_i32 = arith.constant 0 : i32
    %c0_i32_0 = arith.constant 0 : i32
    %c0_i32_1 = arith.constant 0 : i32
    return %c0_i32, %c0_i32_0 : i32, i32
  }
  func.func @transform_11(%arg0: i32, %arg1: i32) -> (i32, i32) {
    %c0_i32 = arith.constant 0 : i32
    %c0_i32_0 = arith.constant 0 : i32
    %c0_i32_1 = arith.constant 0 : i32
    return %c0_i32, %c0_i32_0 : i32, i32
  }
  func.func @transform_12(%arg0: i32, %arg1: i32) -> (i32, i32) {
    %c0_i32 = arith.constant 0 : i32
    %c0_i32_0 = arith.constant 0 : i32
    %c0_i32_1 = arith.constant 0 : i32
    return %c0_i32, %c0_i32_0 : i32, i32
  }
  func.func @transform_13(%arg0: i32, %arg1: i32) -> (i32, i32) {
    %c0_i32 = arith.constant 0 : i32
    %c0_i32_0 = arith.constant 0 : i32
    %c0_i32_1 = arith.constant 0 : i32
    return %c0_i32, %c0_i32_0 : i32, i32
  }
  func.func @transform_14(%arg0: i32, %arg1: i32) -> (i32, i32) {
    %c0_i32 = arith.constant 0 : i32
    %c0_i32_0 = arith.constant 0 : i32
    %c0_i32_1 = arith.constant 0 : i32
    return %c0_i32, %c0_i32_0 : i32, i32
  }
  func.func @transform_15(%arg0: i32, %arg1: i32) -> (i32, i32) {
    %c0_i32 = arith.constant 0 : i32
    %c0_i32_0 = arith.constant 0 : i32
    return %arg0, %c0_i32 : i32, i32
  }
}

</mosaic_0001>

<bundles_post_ra>
// kernel: tpu_custom_call.1
= control target key start
LH: loop header
LB: loop body
LE: loop exit
PB: predicated region body
PF: predicated region fallthrough
CT: control target
= control target key end

     0   :  { %s3911_s0 = inlined_call_operand.vmem [shape: f32[4,4,256], index: 0, kind: input, shape index: {}]   ;;  %s3912_s1 = inlined_call_operand.vmem [shape: f32[4,4], index: 1, kind: input, shape index: {}]   ;;  %s3913_s2 = inlined_call_operand.vmem [shape: f32[4,1], index: 2, kind: input, shape index: {}]   ;;  %s3914_s3 = inlined_call_operand.vmem [shape: f32[16,4], index: 3, kind: input, shape index: {}]   ;;  %s3915_s4 = inlined_call_operand.vmem [shape: f32[16,1], index: 4, kind: input, shape index: {}]   ;;  %s3916_s5 = inlined_call_operand.vmem [shape: f32[32,16], index: 5, kind: input, shape index: {}]   ;;  %s3917_s6 = inlined_call_operand.vmem [shape: f32[32,1], index: 6, kind: input, shape index: {}]   ;;  %s3918_s7 = inlined_call_operand.vmem [shape: f32[1,32], index: 7, kind: input, shape index: {}]   ;;  %s3919_s8 = inlined_call_operand.<no memory space> [shape: f32[1,1], index: 8, kind: input, shape index: {}]   ;;  %s3920_s9 = inlined_call_operand.hbm [shape: f32[256,512], index: 9, kind: input, shape index: {}]   ;;  %s3921_s10 = inlined_call_operand.vmem [shape: f32[1,512], index: 10, kind: input, shape index: {}]   ;;  %s3922_s11 = inlined_call_operand.hbm [shape: f32[512,384], index: 11, kind: input, shape index: {}]   ;;  %s3923_s12 = inlined_call_operand.vmem [shape: f32[1,384], index: 12, kind: input, shape index: {}]   ;;  %s3924_s13 = inlined_call_operand.hbm [shape: f32[384,128], index: 13, kind: input, shape index: {}]   ;;  %s3925_s14 = inlined_call_operand.vmem [shape: f32[1,128], index: 14, kind: input, shape index: {}]   ;;  %s3926_s15 = inlined_call_operand.hbm [shape: f32[4,128], index: 15, kind: output, shape index: {}]  }
   0x1   :  { %3933 = sst [smem:[#allocation17_spill]] %s3911_s0  ;;  %v20_v0 = vstv %s3919_s8 }
   0x2   :  { %3934 = sst [smem:[#allocation18_spill]] %s3916_s5  ;;  %21 = vst [vmem:[#allocation3] sm:$0x1] %v20_v0 }
   0x3   :  { %3935 = sst [smem:[#allocation19_spill]] %s3921_s10 }
   0x4   :  { %3936 = sst [smem:[#allocation20_spill]] %s3923_s12 }
   0x5   :  { %3937 = sst [smem:[#allocation21_spill]] %s3925_s14 }
   0x6   :  { %3938 = sst [smem:[#allocation22_spill]] %s3926_s15 }
   0x7   :  { %22 = vsyncpa [#allocation6], 0 }
   0x8   :  { %24 = vsyncpa [#allocation6 + $0x1], 0 }
   0x9   :  { %25 = vsyncpa [#allocation9], 0 }
   0xa   :  { %26 = vsyncpa [#allocation7], 0  ;;  %s3542_s20 = smov 0   ;;  %s3544_s21 = smov 0  }
   0xb   :  { %s3546_s22 = smov 0   ;;  %s3548_s23 = smov 0  }
   0xc   :  { %s3550_s24 = smov 0   ;;  %s3552_s25 = smov 0  }
   0xd LB: > { %s3927_s8 = sadd.s32 4294967295, %s3441_s25   ;;  %s41_s26 = sadd.s32 1, %s3437_s24  ;;  %s3441_s25 = sphi %s3552_s25, %s32_s25   ;;  %s3437_s24 = sphi %s3550_s24, %s3962_s24   ;;  %s3433_s23 = sphi %s3548_s23, %s3961_s23   ;;  %s3429_s22 = sphi %s3546_s22, %s3960_s22   ;;  %s3425_s21 = sphi %s3544_s21, %s3959_s21   ;;  %s3421_s20 = sphi %s3542_s20, %s3958_s20  }
   0xe   : > { %p42_p0 = scmp.ge.s32.totalorder %s41_s26, 2  ;;  %s53_s27 = sadd.s32 1, %s3429_s22 }
   0xf   : > { %p60_p1 = scmp.ne.s32.totalorder %s3429_s22, %s3425_s21  ;;  %p61_p2 = scmp.eq.s32.totalorder %s3441_s25, 0 }
  0x10   : > { %s3964_s26 = smov (%p42_p0, %s41_s26), 0  ;;  %p260_p4 = scmp.ne.s32.totalorder %s3425_s21, %s3421_s20 }
  0x11   : > { %3939 = sst [smem:[#allocation15_spill]] %s3964_s26  ;;  %p3578_p3 = por %p61_p2, %p60_p1 }
  0x12   : > { %s49_s29 = ssub.s32 %s3437_s24, %s3964_s26  ;;  %p3587_p5 = scmp.eq.s32.totalorder %s3927_s8, 0 }
  0x13   : > { %p51_p6 = scmp.eq.s32.totalorder %s49_s29, 0  ;;  %p2846_p7 = scmp.ge.s32.totalorder %s3441_s25, 1 }
  0x14   : > { %s3941_s30 = scalar_select %p3587_p5, 1, 0 }
  0x15   : > { %p3594_p8 = por %p3587_p5, %p260_p4  ;;  %p402_p9 = scmp.lt.s32.totalorder %s3441_s25, 3 }
  0x16   : > { %s3600_s17 = scalar_select %p51_p6, %s3429_s22, %s53_s27  }
  0x17   : > { %s3942_s16 = scalar_select %p3594_p8, 1, 0 }
  0x18   : > { %3943 = sst [smem:[#allocation16_spill]] %s3600_s17  ;;  %p3602_p10 = pnand %p2846_p7, %p402_p9 }
  0x19   : > { %s3443_s19 = smov [#allocation8]   ;;  %s3444_s8 = smov [#allocation10]  }
  0x1a   : > { %p3203_p11 = pneg %p3602_p10  ;;  %s441_s20 = sshll.u32 %s3443_s19, 4  ;;  %s442_s20 = int_to_ptr.vmem [resolvable:$true] %s441_s20 }
  0x1b   : > { %s457_s27 = sshll.u32 %s3444_s8, 4  ;;  %s3292_s26 = scalar_lea.vmem %s442_s20, 24576  ;;  %s458_s27 = int_to_ptr.vmem [resolvable:$true] %s457_s27 }
  0x1c   : > { %p3610_p12 = pnand %p3203_p11, %p3587_p5  ;;  %p3293_p0 = scmp.ne.s32.totalorder %s442_s20, %s3292_s26 }
  0x1d   : > { %p3300_p4 = scmp.lt.s32.totalorder %s442_s20, %s442_s20  ;;  %p3301_p6 = scmp.lt.s32.totalorder %s3292_s26, %s3292_s26 }
  0x1e   : > { %p3283_p13 = pneg %p3610_p12 }
  0x1f   : > { %p3302_p7 = por %p3301_p6, %p3300_p4 }
  0x20   : > { %p3295_p1 = pnand %p3293_p0, %p3283_p13 }
  0x22   : > { %p3296_p2 = pneg %p3295_p1 }
  0x24   : > { %p3303_p9 = pnand %p3302_p7, %p3296_p2 }
  0x26   : > { %3306 = shalt.err (!%p3303_p9)
}
  0x27   : > { %s3445_s19 = smov 384   ;;  %s3446_s17 = smov 24  }
  0x28   : > { %3206 = dma.hbm_to_vmem [thread:$0]  (!%p3610_p12), %s3922_s11, 24576, %s442_s20, [#allocation9], %s3445_s19, %s3445_s19, %s3446_s17  }
  0x29   : > { %s3318_s14 = scalar_lea.vmem %s458_s27, 6144  ;;  %p3326_p5 = scmp.lt.s32.totalorder %s458_s27, %s458_s27 }
  0x2a   : > { %p3319_p11 = scmp.ne.s32.totalorder %s458_s27, %s3318_s14  ;;  %p3327_p8 = scmp.lt.s32.totalorder %s3318_s14, %s3318_s14 }
  0x2c   : > { %p3321_p0 = pnand %p3319_p11, %p3283_p13  ;;  %p3328_p4 = por %p3327_p8, %p3326_p5 }
  0x2e   : > { %p3322_p1 = pneg %p3321_p0 }
  0x30   : > { %p3329_p2 = pnand %p3328_p4, %p3322_p1 }
  0x32   : > { %3332 = shalt.err (!%p3329_p2)
}
  0x33   : > { %s3447_s26 = smov 128   ;;  %s3448_s12 = smov 8  }
  0x34   : > { %3209 = dma.hbm_to_vmem [thread:$0]  (!%p3610_p12), %s3924_s13, 6144, %s458_s27, [#allocation9], %s3447_s26, %s3447_s26, %s3448_s12  }
  0x35   : > { %p2849_p6 = scmp.ge.s32.totalorder %s3441_s25, 2 }
  0x37   : > { %470 = sbr.rel (%p2849_p6) target bundleno = 88 (0x58), region = 68 }
  0x3c   : > { %473 = sbr.rel (!%p3578_p3) target bundleno = 72 (0x48), region = 72  ;;  %s475_s14 = sand.u32 (%p3578_p3), 1, %s3429_s22  }
  0x3d   : > { %s2851_s15 = sshll.u32 (%p3578_p3), %s3437_s24, 2  ;;  %s2850_s17 = sshll.u32 (%p3578_p3), %s475_s14, 4 }
  0x3e   : > { %s3946_s0 = sld [smem:[#allocation17_spill]] (%p3578_p3)  ;;  %s477_s29 = scalar_lea.vmem (%p3578_p3), [#allocation4], %s2850_s17 }
  0x44   : > { %s482_s8 = scalar_lea.vmem %s3946_s0, %s2851_s15 }
  0x45   : > { %v499_v1 = vld [vmem:[%s482_s8] sm:$0xf]  ;;  %v501_v2 = vld [vmem:[%s482_s8 + $0x8] sm:$0xf]  ;;  %v503_v3 = vld [vmem:[%s482_s8 + $0x10] sm:$0xf] }
  0x46   : > { %500 = vst [vmem:[%s477_s29] sm:$0xf] %v499_v1  ;;  %502 = vst [vmem:[%s477_s29 + $0x4] sm:$0xf] %v501_v2  ;;  %v505_v4 = vld [vmem:[%s482_s8 + $0x18] sm:$0xf] }
  0x47   : > { %504 = vst [vmem:[%s477_s29 + $0x8] sm:$0xf] %v503_v3  ;;  %506 = vst [vmem:[%s477_s29 + $0xc] sm:$0xf] %v505_v4 }
  0x48 PF: > { %s539_s5 = sand.u32 1, %s3429_s22   ;;  %s2907_s10 = sshll.u32 %s3437_s24, 13 }
  0x49   : > { %s2852_s12 = sshll.u32 %s539_s5, 9  ;;  %s550_s14 = scalar_lea.hbm %s3920_s9, %s2907_s10 }
  0x4a   : > { %s543_s15 = scalar_lea.vmem [#allocation5], %s2852_s12  ;;  %s540_s17 = scalar_lea.sflag [#allocation6], %s539_s5 }
  0x4b   : > { %s551_s20 = sshll.u32 %s543_s15, 4  ;;  %s3449_s8 = smov [#allocation5]   ;;  %s552_s20 = int_to_ptr.vmem [resolvable:$true] %s551_s20 }
  0x4c   : > { %s3345_s19 = scalar_lea.vmem %s552_s20, 8192  ;;  %s3349_s29 = sshll.u32 %s3449_s8, 4  ;;  %s3350_s29 = int_to_ptr.vmem [resolvable:$false] %s3349_s29 }
  0x4d   : > { %p3346_p5 = scmp.ne.s32.totalorder %s552_s20, %s3345_s19  ;;  %s3351_s0 = scalar_lea.vmem %s3350_s29, 16384 }
  0x4e   : > { %p3352_p13 = scmp.lt.s32.totalorder %s552_s20, %s3350_s29  ;;  %p3353_p7 = scmp.lt.s32.totalorder %s3351_s0, %s3345_s19 }
  0x4f   : > { %p3347_p8 = pnand %p3346_p5, %p3578_p3 }
  0x50   : > { %p3354_p9 = por %p3353_p7, %p3352_p13 }
  0x51   : > { %p3348_p12 = pneg %p3347_p8 }
  0x53   : > { %p3355_p11 = pnand %p3354_p9, %p3348_p12 }
  0x55   : > { %3358 = shalt.err (!%p3355_p11)
}
  0x56   : > { %s3450_s27 = smov 512   ;;  %s3451_s10 = smov 32  }
  0x57   : > { %3193 = dma.hbm_to_vmem [thread:$0]  (%p3578_p3), %s550_s14, 8192, %s552_s20, %s540_s17, %s3450_s27, %s3450_s27, %s3451_s10  }
  0x58 PF: > { %563 = sbr.rel (%p3602_p10) target bundleno = 1467 (0x5bb), region = 117  ;;  %s566_s5 = sand.u32 (!%p3602_p10), 1, %s3425_s21  }
  0x59   : > { %s2857_s12 = sshll.u32 (!%p3602_p10), %s566_s5, 4  ;;  %s2858_s26 = sshll.u32 (!%p3602_p10), %s566_s5, 9 }
  0x5a   : > { %s568_s15 = scalar_lea.vmem (!%p3602_p10), [#allocation4], %s2857_s12  ;;  %s573_s8 = scalar_lea.sflag (!%p3602_p10), [#allocation6], %s566_s5 }
  0x5b   : > { %s3652_s0 = scalar_lea.vmem (!%p3602_p10), [#allocation5], %s2858_s26  ;;  %p3947_p0 = scmp.ne.s32.totalorder (!%p3602_p10), %s3942_s16, 0 }
  0x5d   : > { %3408 = dma.done.wait (%p3947_p0), %s573_s8, 8192  }
  0x5e   : > { %3410 = vsyncadd (%p3947_p0), %s573_s8, 4294959104  ;;  %p3948_p3 = scmp.ne.s32.totalorder %s3941_s30, 0 }
  0x60   : > { %3412 = dma.done.wait (%p3948_p3), [#allocation9], 30720  }
  0x61   : > { %3414 = vsyncadd (%p3948_p3), [#allocation9], 4294936576  ;;  %p2861_p10 = scmp.ne.s32.totalorder %s3433_s23, 0 }
  0x63   : > { %635 = sbr.rel (%p2861_p10) target bundleno = 106 (0x6a), region = 137 }
  0x68   : > { %v3452_v5 = vmov 0.0  }
  0x69   : > { %636 = vst [vmem:[#allocation2] sm:$0xff] %v3452_v5  ;;  %637 = vst [vmem:[#allocation2 + $0x8] sm:$0xff] %v3452_v5 }
  0x6a PF: > { %v638_v6 = vld [vmem:[%s568_s15] sm:$0xf]  ;;  %vm653_vm0 = vcmask 1043456   ;;  %v3453_v7 = vmov 0.0   ;;  %v639_v8 = vld [vmem:[%s568_s15 + $0x4] sm:$0xf] }
  0x6b   : > { %3074 = vmatprep.subr.mxu0 %v3453_v7  ;;  %3079 = vmatprep.subr.mxu1 %v3453_v7  ;;  %v642_v9 = vld [vmem:[%s3912_s1] sm:$0xf]  ;;  %vm649_vm1 = vcmask 31744   ;;  %vm3454_vm2 = vmmov 0   ;;  %v640_v10 = vld [vmem:[%s568_s15 + $0x8] sm:$0xf] }
  0x6c   : > { %3075 = vmatpush3.msk.msra.mxu0 %vm653_vm0, %v638_v6  ;;  %3076 = vmatprep.mubr.msk.f32.mxu0 %vm3454_vm2, %v3453_v7  ;;  %v641_v11 = vld [vmem:[%s568_s15 + $0xc] sm:$0xf]  ;;  %v3455_v13 = vmov 0   ;;  %s3949_s29 = sld [smem:[#allocation18_spill]]  ;;  %vm1318_vm3 = vcmask 130048   ;;  %vm1847_vm4 = vcmask 1041409  }
  0x6d   : > { %3080 = vmatpush3.msk.msra.mxu1 %vm653_vm0, %v639_v8  ;;  %3081 = vmatprep.mubr.msk.f32.mxu1 %vm3454_vm2, %v3453_v7  ;;  %v643_v12 = vld [vmem:[%s3913_s2] sm:$0xf]  ;;  %v953_v14 = vld [vmem:[%s3915_s4 + $0x8] sm:$0xff]  ;;  %v1297_v16 = vld [vmem:[%s3917_s6 + $0x18] sm:$0xff]  ;;  %vm1849_vm5 = vcmask 1042434   ;;  %vm1851_vm6 = vcmask 1043459  }
  0x6e   : > { %3077 = vmatmul.mubr.msk.f32.vlgmr.msra.gmra.mxu0 %vm649_vm1, %v642_v9  ;;  %3082 = vmatmul.mubr.msk.f32.vlgmr.msra.gmra.mxu1 %vm649_vm1, %v642_v9  ;;  %v1295_v15 = vld [vmem:[%s3917_s6 + $0x8] sm:$0xff]  ;;  %v950_v17 = vld [vmem:[%s3914_s3] sm:$0xff]  ;;  %v1296_v21 = vld [vmem:[%s3917_s6 + $0x10] sm:$0xff]  ;;  %p2900_p1 = scmp.ne.s32.totalorder %s3433_s23, 1 }
  0x6f   : > { %3084 = vmatprep.subr.mxu0 %v3453_v7  ;;  %3089 = vmatprep.subr.mxu1 %v3453_v7  ;;  %v952_v18 = vld [vmem:[%s3915_s4] sm:$0xff]  ;;  %v2899_v22 = vld [vmem:[#allocation3] ss:$0 sm:$0xff]  ;;  %v951_v34 = vld [vmem:[%s3914_s3 + $0x8] sm:$0xff]  ;;  %s3950_s8 = sld [smem:[#allocation19_spill]] (!%p2900_p1) }
  0x70   : > { %3085 = vmatpush3.msk.msra.mxu0 %vm653_vm0, %v640_v10  ;;  %3086 = vmatprep.mubr.msk.f32.mxu0 %vm3454_vm2, %v3453_v7  ;;  %v2898_v19 = vld [vmem:[%s3918_s7] ss:$0 sm:$0xff]  ;;  %v1837_v10 = vld [vmem:[%s3652_s0 + $0x1e0] sm:$0xff]  ;;  %s3951_s30 = sld [smem:[#allocation20_spill]] (!%p2900_p1) }
  0x71   : > { %3090 = vmatpush3.msk.msra.mxu1 %vm653_vm0, %v641_v11  ;;  %3091 = vmatprep.mubr.msk.f32.mxu1 %vm3454_vm2, %v3453_v7  ;;  %v1294_v20 = vld [vmem:[%s3917_s6] sm:$0xff]  ;;  %s3952_s20 = sld [smem:[#allocation21_spill]] (!%p2900_p1) }
  0x72   : > { %3087 = vmatmul.mubr.msk.f32.vlgmr.msra.gmra.mxu0 %vm649_vm1, %v642_v9  ;;  %3092 = vmatmul.mubr.msk.f32.vlgmr.msra.gmra.mxu1 %vm649_vm1, %v642_v9  ;;  %v1290_v41 = vld [vmem:[%s3949_s29] sm:$0xff]  ;;  %v1291_v62 = vld [vmem:[%s3949_s29 + $0x8] sm:$0xff]  ;;  %v1292_v5 = vld [vmem:[%s3949_s29 + $0x10] sm:$0xff] }
  0x73   : > { %3279 = vset.pattern.permute.xlu0 %v3455_v13  ;;  %3280 = vset.pattern.permute.xlu1 %v3455_v13  ;;  %v1293_v6 = vld [vmem:[%s3949_s29 + $0x18] sm:$0xff]  ;;  %v1840_v9 = vld [vmem:[%s3652_s0 + $0x1f8] sm:$0xff]  ;;  %v1839_v11 = vld [vmem:[%s3652_s0 + $0x1f0] sm:$0xff] }
  0x74   : > { %646 = vperm.xlu0 %3279, %v643_v12   ;;  %3096 = vmatprep.mubr.msk.f32.mxu0 %vm649_vm1, %v950_v17  ;;  %v1838_v8 = vld [vmem:[%s3652_s0 + $0x1e8] sm:$0xff]  ;;  %v1836_v13 = vld [vmem:[%s3652_s0 + $0x1d8] sm:$0xff] }
  0x75   : > { %3101 = vmatprep.mubr.msk.f32.mxu1 %vm649_vm1, %v950_v17  ;;  %956 = vperm.xlu1 %3280, %v952_v18   ;;  %v1834_v12 = vld [vmem:[%s3652_s0 + $0x1c8] sm:$0xff]  ;;  %v1831_v18 = vld [vmem:[%s3652_s0 + $0x1b0] sm:$0xff] }
  0x78   : > { %961 = vperm.xlu0 %3279, %v953_v14   ;;  %v1833_v14 = vld [vmem:[%s3652_s0 + $0x1c0] sm:$0xff] }
  0x79   : > { %1300 = vperm.xlu1 %3280, %v1294_v20   ;;  %v1828_v20 = vld [vmem:[%s3652_s0 + $0x198] sm:$0xff] }
  0x7c   : > { %1305 = vperm.xlu0 %3279, %v1295_v15   ;;  %v1830_v15 = vld [vmem:[%s3652_s0 + $0x1a8] sm:$0xff] }
  0x7d   : > { %1310 = vperm.xlu1 %3280, %v1296_v21   ;;  %v1825_v21 = vld [vmem:[%s3652_s0 + $0x180] sm:$0xff] }
  0x80   : > { %1315 = vperm.xlu0 %3279, %v1297_v16   ;;  %v1832_v16 = vld [vmem:[%s3652_s0 + $0x1b8] sm:$0xff] }
  0x81   : > { %1693 = vbcast.lane.b32.xlu1 %v2898_v19, 256 }
  0x84   : > { %1697 = vbcast.lane.b32.xlu0 %v2898_v19, 264 }
  0x85   : > { %1701 = vbcast.lane.b32.xlu1 %v2898_v19, 272 }
  0x88   : > { %1705 = vbcast.lane.b32.xlu0 %v2898_v19, 280  ;;  %v1826_v19 = vld [vmem:[%s3652_s0 + $0x188] sm:$0xff] }
  0x89   : > { %1766 = vperm.xlu1 %3280, %v2899_v22   ;;  %v1827_v22 = vld [vmem:[%s3652_s0 + $0x190] sm:$0xff] }
  0xef   : > { %v647_v23 = vpop.permute.xlu0 %646 }
  0xf0   : > { %v957_v45 = vpop.permute.xlu1 %956 }
  0xf3   : > { %v962_v42 = vpop.permute.xlu0 %961 }
 0x12e   : > { %v723_v24 = vpop.f32.mrf.mxu0  ;;  %v796_v25 = vpop.f32.mrf.mxu1 }
 0x12f   : > { %v724_v26 = vadd.f32 %v723_v24, %v647_v23  ;;  %v797_v27 = vadd.f32 %v796_v25, %v647_v23  ;;  %v1824_v24 = vld [vmem:[%s3652_s0 + $0x178] sm:$0xff]  ;;  %v1821_v25 = vld [vmem:[%s3652_s0 + $0x160] sm:$0xff] }
 0x130   : > { %v3078_v28 = vpop.f32.mrf.mxu0  ;;  %v3083_v29 = vpop.f32.mrf.mxu1 }
 0x131   : > { %v946_v30 = vmax.f32 %v724_v26, 0.0  ;;  %v947_v31 = vmax.f32 %v797_v27, 0.0  ;;  %v1823_v26 = vld [vmem:[%s3652_s0 + $0x170] sm:$0xff]  ;;  %v1818_v27 = vld [vmem:[%s3652_s0 + $0x148] sm:$0xff]  ;;  %v1820_v28 = vld [vmem:[%s3652_s0 + $0x158] sm:$0xff] }
 0x132   : > { %v869_v32 = vpop.f32.mrf.mxu0  ;;  %v942_v33 = vpop.f32.mrf.mxu1  ;;  %v1817_v29 = vld [vmem:[%s3652_s0 + $0x140] sm:$0xff] }
 0x133   : > { %v870_v35 = vadd.f32 %v869_v32, %v647_v23  ;;  %v943_v36 = vadd.f32 %v942_v33, %v647_v23  ;;  %3094 = vmatprep.subr.msk.mxu0 %vm653_vm0, %v946_v30  ;;  %3099 = vmatprep.subr.msk.mxu1 %vm653_vm0, %v947_v31  ;;  %v1822_v23 = vld [vmem:[%s3652_s0 + $0x168] sm:$0xff]  ;;  %v1816_v32 = vld [vmem:[%s3652_s0 + $0x138] sm:$0xff]  ;;  %v1813_v33 = vld [vmem:[%s3652_s0 + $0x120] sm:$0xff] }
 0x134   : > { %v3088_v37 = vpop.f32.mrf.mxu0  ;;  %3095 = vmatpush3.msk.msra.mxu0 %vm653_vm0, %v946_v30  ;;  %3100 = vmatpush3.msk.msra.mxu1 %vm653_vm0, %v947_v31  ;;  %v3093_v38 = vpop.f32.mrf.mxu1  ;;  %v1819_v30 = vld [vmem:[%s3652_s0 + $0x150] sm:$0xff]  ;;  %v1814_v31 = vld [vmem:[%s3652_s0 + $0x128] sm:$0xff] }
 0x135   : > { %v948_v39 = vmax.f32 %v870_v35, 0.0  ;;  %v949_v40 = vmax.f32 %v943_v36, 0.0  ;;  %3097 = vmatmul.mubr.msk.f32.vlgmr.msra.gmra.mxu0 %vm649_vm1, %v951_v34  ;;  %3102 = vmatmul.mubr.msk.f32.vlgmr.msra.gmra.mxu1 %vm649_vm1, %v951_v34  ;;  %v1810_v35 = vld [vmem:[%s3652_s0 + $0x108] sm:$0xff]  ;;  %v1812_v36 = vld [vmem:[%s3652_s0 + $0x118] sm:$0xff]  ;;  %v1809_v37 = vld [vmem:[%s3652_s0 + $0x100] sm:$0xff] }
 0x136   : > { %3106 = vmatprep.mubr.msk.f32.mxu0 %vm649_vm1, %v950_v17  ;;  %3111 = vmatprep.mubr.msk.f32.mxu1 %vm649_vm1, %v950_v17  ;;  %v1829_v17 = vld [vmem:[%s3652_s0 + $0x1a0] sm:$0xff]  ;;  %v1811_v38 = vld [vmem:[%s3652_s0 + $0x110] sm:$0xff] }
 0x137   : > { %3104 = vmatprep.subr.msk.mxu0 %vm653_vm0, %v948_v39  ;;  %3109 = vmatprep.subr.msk.mxu1 %vm653_vm0, %v949_v40 }
 0x138   : > { %3105 = vmatpush3.msk.msra.mxu0 %vm653_vm0, %v948_v39  ;;  %3110 = vmatpush3.msk.msra.mxu1 %vm653_vm0, %v949_v40  ;;  %v1806_v39 = vld [vmem:[%s3652_s0 + $0xe8] sm:$0xff]  ;;  %v1808_v40 = vld [vmem:[%s3652_s0 + $0xf8] sm:$0xff] }
 0x139   : > { %3107 = vmatmul.mubr.msk.f32.vlgmr.msra.gmra.mxu0 %vm649_vm1, %v951_v34  ;;  %3112 = vmatmul.mubr.msk.f32.vlgmr.msra.gmra.mxu1 %vm649_vm1, %v951_v34  ;;  %v1815_v34 = vld [vmem:[%s3652_s0 + $0x130] sm:$0xff] }
 0x13a   : > { %3118 = vmatprep.mubr.msk.f32.mxu0 %vm1318_vm3, %v1290_v41  ;;  %3128 = vmatprep.mubr.msk.f32.mxu1 %vm1318_vm3, %v1290_v41 }
 0x1f5   : > { %v3098_v43 = vpop.f32.mrf.mxu0  ;;  %v3103_v44 = vpop.f32.mrf.mxu1 }
 0x1f6   : > { %v1045_v46 = vadd.f32 %v3098_v43, %v962_v42  ;;  %v1123_v47 = vadd.f32 %v3103_v44, %v962_v42  ;;  %v1802_v43 = vld [vmem:[%s3652_s0 + $0xc8] sm:$0xff]  ;;  %v1804_v44 = vld [vmem:[%s3652_s0 + $0xd8] sm:$0xff] }
 0x1f7   : > { %v1039_v48 = vpop.f32.mrf.mxu0  ;;  %v1117_v49 = vpop.f32.mrf.mxu1 }
 0x1f8   : > { %v1283_v50 = vmax.f32 %v1045_v46, 0.0  ;;  %v1285_v51 = vmax.f32 %v1123_v47, 0.0  ;;  %v1040_v52 = vadd.f32 %v1039_v48, %v957_v45  ;;  %v1118_v53 = vadd.f32 %v1117_v49, %v957_v45  ;;  %v1803_v46 = vld [vmem:[%s3652_s0 + $0xd0] sm:$0xff]  ;;  %v1798_v47 = vld [vmem:[%s3652_s0 + $0xa8] sm:$0xff]  ;;  %v1800_v48 = vld [vmem:[%s3652_s0 + $0xb8] sm:$0xff] }
 0x1f9   : > { %v3108_v54 = vpop.f32.mrf.mxu0  ;;  %v3113_v55 = vpop.f32.mrf.mxu1  ;;  %v1797_v49 = vld [vmem:[%s3652_s0 + $0xa0] sm:$0xff] }
 0x1fa   : > { %v1282_v56 = vmax.f32 %v1040_v52, 0.0  ;;  %v1284_v57 = vmax.f32 %v1118_v53, 0.0  ;;  %v1201_v58 = vadd.f32 %v3108_v54, %v962_v42  ;;  %v1279_v59 = vadd.f32 %v3113_v55, %v962_v42  ;;  %3114 = vmatprep.subr.mxu0 %v1283_v50  ;;  %3124 = vmatprep.subr.mxu1 %v1285_v51  ;;  %v1807_v42 = vld [vmem:[%s3652_s0 + $0xf0] sm:$0xff]  ;;  %v1796_v52 = vld [vmem:[%s3652_s0 + $0x98] sm:$0xff]  ;;  %v1793_v53 = vld [vmem:[%s3652_s0 + $0x80] sm:$0xff] }
 0x1fb   : > { %v1195_v60 = vpop.f32.mrf.mxu0  ;;  %v1273_v61 = vpop.f32.mrf.mxu1  ;;  %3115 = vmatpush3.msra.mxu0 %v1283_v50  ;;  %3125 = vmatpush3.msra.mxu1 %v1285_v51  ;;  %v1799_v50 = vld [vmem:[%s3652_s0 + $0xb0] sm:$0xff]  ;;  %v1794_v51 = vld [vmem:[%s3652_s0 + $0x88] sm:$0xff] }
 0x1fc   : > { %v1287_v63 = vmax.f32 %v1201_v58, 0.0  ;;  %v1289_v0 = vmax.f32 %v1279_v59, 0.0  ;;  %v1196_v1 = vadd.f32 %v1195_v60, %v957_v45  ;;  %v1274_v2 = vadd.f32 %v1273_v61, %v957_v45  ;;  %3116 = vmatprep.subr.mxu0 %v1282_v56  ;;  %3126 = vmatprep.subr.mxu1 %v1284_v57  ;;  %v1801_v45 = vld [vmem:[%s3652_s0 + $0xc0] sm:$0xff]  ;;  %v1795_v54 = vld [vmem:[%s3652_s0 + $0x90] sm:$0xff]  ;;  %v1790_v55 = vld [vmem:[%s3652_s0 + $0x68] sm:$0xff] }
 0x1fd   : > { %3117 = vmatpush3.msra.mxu0 %v1282_v56  ;;  %3127 = vmatpush3.msra.mxu1 %v1284_v57  ;;  %v1792_v56 = vld [vmem:[%s3652_s0 + $0x78] sm:$0xff]  ;;  %v1789_v57 = vld [vmem:[%s3652_s0 + $0x60] sm:$0xff]  ;;  %v1791_v58 = vld [vmem:[%s3652_s0 + $0x70] sm:$0xff] }
 0x1fe   : > { %v1286_v3 = vmax.f32 %v1196_v1, 0.0  ;;  %v1288_v4 = vmax.f32 %v1274_v2, 0.0  ;;  %3119 = vmatmul.mubr.msk.f32.vlgmr.msra.gmra.mxu0 %vm1318_vm3, %v1291_v62  ;;  %3129 = vmatmul.mubr.msk.f32.vlgmr.msra.gmra.mxu1 %vm1318_vm3, %v1291_v62  ;;  %v1786_v59 = vld [vmem:[%s3652_s0 + $0x48] sm:$0xff]  ;;  %v1788_v60 = vld [vmem:[%s3652_s0 + $0x58] sm:$0xff]  ;;  %v1785_v61 = vld [vmem:[%s3652_s0 + $0x40] sm:$0xff] }
 0x1ff   : > { %3134 = vmatprep.subr.mxu0 %v1287_v63  ;;  %3144 = vmatprep.subr.mxu1 %v1289_v0  ;;  %v1781_v1 = vld [vmem:[%s3652_s0 + $0x20] sm:$0xff]  ;;  %v1783_v2 = vld [vmem:[%s3652_s0 + $0x30] sm:$0xff] }
 0x200   : > { %3135 = vmatpush3.msra.mxu0 %v1287_v63  ;;  %3145 = vmatpush3.msra.mxu1 %v1289_v0  ;;  %v1782_v63 = vld [vmem:[%s3652_s0 + $0x28] sm:$0xff]  ;;  %v1784_v0 = vld [vmem:[%s3652_s0 + $0x38] sm:$0xff] }
 0x201   : > { %3136 = vmatprep.subr.mxu0 %v1286_v3  ;;  %3146 = vmatprep.subr.mxu1 %v1288_v4 }
 0x202   : > { %3121 = vmatprep.mubr.msk.f32.mxu0 %vm1318_vm3, %v1292_v5  ;;  %3131 = vmatprep.mubr.msk.f32.mxu1 %vm1318_vm3, %v1292_v5 }
 0x203   : > { %3137 = vmatpush3.msra.mxu0 %v1286_v3  ;;  %3147 = vmatpush3.msra.mxu1 %v1288_v4  ;;  %v1778_v3 = vld [vmem:[%s3652_s0 + $0x8] sm:$0xff]  ;;  %v1780_v4 = vld [vmem:[%s3652_s0 + $0x18] sm:$0xff] }
 0x204   : > { %3122 = vmatmul.mubr.msk.f32.gmra.mxu0 %vm1318_vm3, %v1293_v6  ;;  %3132 = vmatmul.mubr.msk.f32.gmra.mxu1 %vm1318_vm3, %v1293_v6 }
 0x205   : > { %3138 = vmatprep.mubr.msk.f32.mxu0 %vm1318_vm3, %v1290_v41  ;;  %3148 = vmatprep.mubr.msk.f32.mxu1 %vm1318_vm3, %v1290_v41  ;;  %v1805_v41 = vld [vmem:[%s3652_s0 + $0xe0] sm:$0xff] }
 0x206   : > { %1854 = vmatprep.subr.mxu0 %v1838_v8  ;;  %1925 = vmatprep.subr.mxu1 %v1840_v9  ;;  %v1301_v8 = vpop.permute.xlu1 %1300  ;;  %v1306_v9 = vpop.permute.xlu0 %1305 }
 0x208   : > { %3139 = vmatmul.mubr.msk.f32.vlgmr.msra.gmra.mxu0 %vm1318_vm3, %v1291_v62  ;;  %3149 = vmatmul.mubr.msk.f32.vlgmr.msra.gmra.mxu1 %vm1318_vm3, %v1291_v62  ;;  %v1787_v62 = vld [vmem:[%s3652_s0 + $0x50] sm:$0xff] }
 0x209   : > { %3141 = vmatprep.mubr.msk.f32.mxu0 %vm1318_vm3, %v1292_v5  ;;  %3151 = vmatprep.mubr.msk.f32.mxu1 %vm1318_vm3, %v1292_v5  ;;  %v1777_v5 = vld [vmem:[%s3652_s0] sm:$0xff] }
 0x20a   : > { %1855 = vmatpush1.msra.mxu0 %v1837_v10  ;;  %1926 = vmatpush1.msra.mxu1 %v1839_v11  ;;  %v3822_v10 = vpop.permute.xlu1 %1310 }
 0x20b   : > { %1856 = vmatprep.subr.mxu0 %v1834_v12  ;;  %1927 = vmatprep.subr.mxu1 %v1836_v13  ;;  %v1316_v13 = vpop.permute.xlu0 %1315 }
 0x20c   : > { %3142 = vmatmul.mubr.msk.f32.gmra.mxu0 %vm1318_vm3, %v1293_v6  ;;  %3152 = vmatmul.mubr.msk.f32.gmra.mxu1 %vm1318_vm3, %v1293_v6  ;;  %v1779_v6 = vld [vmem:[%s3652_s0 + $0x10] sm:$0xff] }
 0x20d   : > { %1918 = vmatprep.mubr.f32.mxu0 %v3453_v7  ;;  %1989 = vmatprep.mubr.f32.mxu1 %v3453_v7  ;;  %v1835_v7 = vld [vmem:[%s3652_s0 + $0x1d0] sm:$0xff] }
 0x20e   : > { %1857 = vmatpush1.msra.mxu0 %v1833_v14  ;;  %1928 = vmatpush1.msra.mxu1 %v1835_v7 }
 0x20f   : > { %1858 = vmatprep.subr.mxu0 %v1830_v15  ;;  %1929 = vmatprep.subr.mxu1 %v1832_v16 }
 0x210   : > { %1859 = vmatpush1.msra.mxu0 %v1829_v17  ;;  %1930 = vmatpush1.msra.mxu1 %v1831_v18 }
 0x211   : > { %1860 = vmatprep.subr.mxu0 %v1826_v19  ;;  %1931 = vmatprep.subr.mxu1 %v1828_v20  ;;  %v1694_v19 = vpop.permute.xlu1 %1693 }
 0x212   : > { %1861 = vmatpush1.msra.mxu0 %v1825_v21  ;;  %1932 = vmatpush1.msra.mxu1 %v1827_v22  ;;  %v1698_v21 = vpop.permute.xlu0 %1697 }
 0x213   : > { %1862 = vmatprep.subr.mxu0 %v1822_v23  ;;  %1933 = vmatprep.subr.mxu1 %v1824_v24 }
 0x214   : > { %1863 = vmatpush1.msra.mxu0 %v1821_v25  ;;  %1934 = vmatpush1.msra.mxu1 %v1823_v26 }
 0x215   : > { %1864 = vmatprep.subr.mxu0 %v1818_v27  ;;  %1935 = vmatprep.subr.mxu1 %v1820_v28 }
 0x216   : > { %1865 = vmatpush1.msra.mxu0 %v1817_v29  ;;  %1936 = vmatpush1.msra.mxu1 %v1819_v30 }
 0x217   : > { %1866 = vmatprep.subr.mxu0 %v1814_v31  ;;  %1937 = vmatprep.subr.mxu1 %v1816_v32 }
 0x218   : > { %1867 = vmatpush1.msra.mxu0 %v1813_v33  ;;  %1938 = vmatpush1.msra.mxu1 %v1815_v34 }
 0x219   : > { %1868 = vmatprep.subr.mxu0 %v1810_v35  ;;  %1939 = vmatprep.subr.mxu1 %v1812_v36 }
 0x21a   : > { %1869 = vmatpush1.msra.mxu0 %v1809_v37  ;;  %1940 = vmatpush1.msra.mxu1 %v1811_v38 }
 0x21b   : > { %1870 = vmatprep.subr.mxu0 %v1806_v39  ;;  %1941 = vmatprep.subr.mxu1 %v1808_v40  ;;  %v1702_v39 = vpop.permute.xlu1 %1701 }
 0x21c   : > { %1871 = vmatpush1.msra.mxu0 %v1805_v41  ;;  %1942 = vmatpush1.msra.mxu1 %v1807_v42  ;;  %v1706_v42 = vpop.permute.xlu0 %1705 }
 0x21d   : > { %1872 = vmatprep.subr.mxu0 %v1802_v43  ;;  %1943 = vmatprep.subr.mxu1 %v1804_v44 }
 0x21e   : > { %1873 = vmatpush1.msra.mxu0 %v1801_v45  ;;  %1944 = vmatpush1.msra.mxu1 %v1803_v46 }
 0x21f   : > { %1874 = vmatprep.subr.mxu0 %v1798_v47  ;;  %1945 = vmatprep.subr.mxu1 %v1800_v48 }
 0x220   : > { %1875 = vmatpush1.msra.mxu0 %v1797_v49  ;;  %1946 = vmatpush1.msra.mxu1 %v1799_v50 }
 0x221   : > { %1876 = vmatprep.subr.mxu0 %v1794_v51  ;;  %1947 = vmatprep.subr.mxu1 %v1796_v52 }
 0x222   : > { %1877 = vmatpush1.msra.mxu0 %v1793_v53  ;;  %1948 = vmatpush1.msra.mxu1 %v1795_v54 }
 0x223   : > { %1878 = vmatprep.subr.mxu0 %v1790_v55  ;;  %1949 = vmatprep.subr.mxu1 %v1792_v56 }
 0x224   : > { %1879 = vmatpush1.msra.mxu0 %v1789_v57  ;;  %1950 = vmatpush1.msra.mxu1 %v1791_v58 }
 0x225   : > { %1880 = vmatprep.subr.mxu0 %v1786_v59  ;;  %1951 = vmatprep.subr.mxu1 %v1788_v60 }
 0x226   : > { %1881 = vmatpush1.msra.mxu0 %v1785_v61  ;;  %1952 = vmatpush1.msra.mxu1 %v1787_v62 }
 0x227   : > { %1882 = vmatprep.subr.mxu0 %v1782_v63  ;;  %1953 = vmatprep.subr.mxu1 %v1784_v0 }
 0x228   : > { %1883 = vmatpush1.msra.mxu0 %v1781_v1  ;;  %1954 = vmatpush1.msra.mxu1 %v1783_v2 }
 0x229   : > { %1884 = vmatprep.subr.mxu0 %v1778_v3  ;;  %1955 = vmatprep.subr.mxu1 %v1780_v4 }
 0x22a   : > { %1885 = vmatpush1.msra.mxu0 %v1777_v5  ;;  %1956 = vmatpush1.msra.mxu1 %v1779_v6 }
 0x2be   : > { %v3120_v11 = vpop.f32.mrf.mxu0  ;;  %v3130_v12 = vpop.f32.mrf.mxu1 }
 0x2bf   : > { %v1403_v15 = vadd.f32 %v3120_v11, %v1306_v9  ;;  %v1488_v18 = vadd.f32 %v3130_v12, %v1306_v9 }
 0x2c0   : > { %v1397_v14 = vpop.f32.mrf.mxu0  ;;  %v1482_v7 = vpop.f32.mrf.mxu1 }
 0x2c1   : > { %v1398_v16 = vadd.f32 %v1397_v14, %v1301_v8  ;;  %v1483_v17 = vadd.f32 %v1482_v7, %v1301_v8  ;;  %v1672_v25 = vmax.f32 %v1403_v15, 0.0  ;;  %v1676_v28 = vmax.f32 %v1488_v18, 0.0 }
 0x2c3   : > { %v1671_v20 = vmax.f32 %v1398_v16, 0.0  ;;  %v1675_v22 = vmax.f32 %v1483_v17, 0.0  ;;  %v1708_v40 = vmul.f32 %v1698_v21, %v1672_v25  ;;  %v1712_v44 = vmul.f32 %v1698_v21, %v1676_v28 }
 0x2c4   : > { %v3123_v23 = vpop.f32.mrf.mxu0  ;;  %v3133_v24 = vpop.f32.mrf.mxu1 }
 0x2c5   : > { %v1413_v26 = vadd.f32 %v3123_v23, %v1316_v13  ;;  %v1498_v27 = vadd.f32 %v3133_v24, %v1316_v13  ;;  %v1707_v31 = vmul.f32 %v1694_v19, %v1671_v20  ;;  %v1711_v33 = vmul.f32 %v1694_v19, %v1675_v22 }
 0x2c6   : > { %v1407_v29 = vpop.f32.mrf.mxu0  ;;  %v1492_v30 = vpop.f32.mrf.mxu1 }
 0x2c7   : > { %v1408_v32 = vadd.f32 %v1407_v29, %v3822_v10  ;;  %v1674_v34 = vmax.f32 %v1413_v26, 0.0  ;;  %v1678_v35 = vmax.f32 %v1498_v27, 0.0  ;;  %v1493_v36 = vadd.f32 %v1492_v30, %v3822_v10 }
 0x2c8   : > { %v3140_v37 = vpop.f32.mrf.mxu0  ;;  %v3150_v38 = vpop.f32.mrf.mxu1  ;;  %v1723_v50 = vadd.f32 %v1708_v40, %v1707_v31  ;;  %v1732_v54 = vadd.f32 %v1712_v44, %v1711_v33 }
 0x2c9   : > { %v1673_v41 = vmax.f32 %v1408_v32, 0.0  ;;  %v1573_v43 = vadd.f32 %v3140_v37, %v1306_v9  ;;  %v1677_v45 = vmax.f32 %v1493_v36, 0.0  ;;  %v1658_v46 = vadd.f32 %v3150_v38, %v1306_v9 }
 0x2ca   : > { %v1567_v47 = vpop.f32.mrf.mxu0  ;;  %v1652_v48 = vpop.f32.mrf.mxu1  ;;  %v1710_v55 = vmul.f32 %v1706_v42, %v1674_v34  ;;  %v1714_v56 = vmul.f32 %v1706_v42, %v1678_v35 }
 0x2cb   : > { %v1709_v49 = vmul.f32 %v1702_v39, %v1673_v41  ;;  %v1568_v51 = vadd.f32 %v1567_v47, %v1301_v8  ;;  %v1653_v52 = vadd.f32 %v1652_v48, %v1301_v8  ;;  %v1713_v53 = vmul.f32 %v1702_v39, %v1677_v45 }
 0x2cc   : > { %v3143_v57 = vpop.f32.mrf.mxu0  ;;  %v3153_v58 = vpop.f32.mrf.mxu1  ;;  %v1680_v60 = vmax.f32 %v1573_v43, 0.0  ;;  %v1684_v0 = vmax.f32 %v1658_v46, 0.0 }
 0x2cd   : > { %v1724_v59 = vadd.f32 %v1723_v50, %v1709_v49  ;;  %v1679_v61 = vmax.f32 %v1568_v51, 0.0  ;;  %v1683_v62 = vmax.f32 %v1653_v52, 0.0  ;;  %v1733_v63 = vadd.f32 %v1732_v54, %v1713_v53  ;;  %v1767_v46 = vpop.permute.xlu1 %1766 }
 0x2ce   : > { %v1583_v1 = vadd.f32 %v3143_v57, %v1316_v13  ;;  %v1668_v2 = vadd.f32 %v3153_v58, %v1316_v13  ;;  %v1577_v3 = vpop.f32.mrf.mxu0  ;;  %v1662_v4 = vpop.f32.mrf.mxu1  ;;  %v1716_v7 = vmul.f32 %v1698_v21, %v1680_v60  ;;  %v1720_v18 = vmul.f32 %v1698_v21, %v1684_v0 }
 0x2cf   : > { %v1725_v5 = vadd.f32 %v1724_v59, %v1710_v55  ;;  %v1715_v6 = vmul.f32 %v1694_v19, %v1679_v61  ;;  %v1578_v8 = vadd.f32 %v1577_v3, %v3822_v10  ;;  %v1734_v9 = vadd.f32 %v1733_v63, %v1714_v56  ;;  %v1842_v3 = vld [vmem:[#allocation2 + $0x8] sm:$0xff] }
 0x2d0   : > { %v1719_v11 = vmul.f32 %v1694_v19, %v1683_v62  ;;  %v1663_v12 = vadd.f32 %v1662_v4, %v3822_v10  ;;  %v1682_v15 = vmax.f32 %v1583_v1, 0.0  ;;  %v1686_v20 = vmax.f32 %v1668_v2, 0.0  ;;  %v1841_v1 = vld [vmem:[#allocation2] sm:$0xff] }
 0x2d1   : > { %v1726_v14 = vrot.slane %v1725_v5, 4  ;;  %v1681_v16 = vmax.f32 %v1578_v8, 0.0  ;;  %v1735_v17 = vrot.slane %v1734_v9, 4  ;;  %v1741_v13 = vadd.f32 %v1716_v7, %v1715_v6 }
 0x2d2   : > { %v1685_v22 = vmax.f32 %v1663_v12, 0.0  ;;  %v1750_v26 = vadd.f32 %v1720_v18, %v1719_v11  ;;  %v1718_v29 = vmul.f32 %v1706_v42, %v1682_v15  ;;  %v1722_v31 = vmul.f32 %v1706_v42, %v1686_v20 }
 0x2d3   : > { %v1727_v23 = vadd.f32 %v1726_v14, %v1725_v5  ;;  %v1717_v24 = vmul.f32 %v1702_v39, %v1681_v16  ;;  %v1736_v25 = vadd.f32 %v1735_v17, %v1734_v9 }
 0x2d4   : > { %v1721_v27 = vmul.f32 %v1702_v39, %v1685_v22 }
 0x2d5   : > { %v1728_v28 = vrot.slane %v1727_v23, 2  ;;  %v1742_v30 = vadd.f32 %v1741_v13, %v1717_v24  ;;  %v1737_v19 = vrot.slane %v1736_v25, 2 }
 0x2d6   : > { %v1751_v10 = vadd.f32 %v1750_v26, %v1721_v27 }
 0x2d7   : > { %v1729_v32 = vadd.f32 %v1728_v28, %v1727_v23  ;;  %v1743_v33 = vadd.f32 %v1742_v30, %v1718_v29  ;;  %v1738_v34 = vadd.f32 %v1737_v19, %v1736_v25 }
 0x2d8   : > { %v1752_v35 = vadd.f32 %v1751_v10, %v1722_v31 }
 0x2d9   : > { %v1730_v36 = vrot.slane %v1729_v32, 1  ;;  %v1744_v21 = vrot.slane %v1743_v33, 4  ;;  %v1739_v37 = vrot.slane %v1738_v34, 1 }
 0x2da   : > { %v1753_v38 = vrot.slane %v1752_v35, 4 }
 0x2db   : > { %v1745_v40 = vadd.f32 %v1744_v21, %v1743_v33  ;;  %v1731_v41 = vadd.f32 %v1730_v36, %v1729_v32  ;;  %v1740_v43 = vadd.f32 %v1739_v37, %v1738_v34 }
 0x2dc   : > { %v1754_v44 = vadd.f32 %v1753_v38, %v1752_v35 }
 0x2dd   : > { %v1746_v45 = vrot.slane %v1745_v40, 2  ;;  %v1769_v48 = vadd.f32 %v1767_v46, %v1731_v41  ;;  %v1770_v49 = vadd.f32 %v1767_v46, %v1740_v43 }
 0x2de   : > { %v1755_v39 = vrot.slane %v1754_v44, 2 }
 0x2df   : > { %v1747_v47 = vadd.f32 %v1746_v45, %v1745_v40  ;;  %v1773_v53 = vmax.f32 %v1769_v48, 0.0  ;;  %v1774_v54 = vmax.f32 %v1770_v49, 0.0 }
 0x2e0   : > { %v1756_v42 = vadd.f32 %v1755_v39, %v1754_v44 }
 0x2e1   : > { %v1748_v50 = vrot.slane %v1747_v47, 1  ;;  %v1848_v60 = vsel %vm1847_vm4, %v1774_v54, %v1773_v53 }
 0x2e2   : > { %v1757_v51 = vrot.slane %v1756_v42, 1 }
 0x2e3   : > { %v1749_v52 = vadd.f32 %v1748_v50, %v1747_v47 }
 0x2e4   : > { %v1758_v55 = vadd.f32 %v1757_v51, %v1756_v42 }
 0x2e5   : > { %v1771_v56 = vadd.f32 %v1767_v46, %v1749_v52 }
 0x2e6   : > { %v1772_v57 = vadd.f32 %v1767_v46, %v1758_v55 }
 0x2e7   : > { %v1775_v58 = vmax.f32 %v1771_v56, 0.0 }
 0x2e8   : > { %v1776_v59 = vmax.f32 %v1772_v57, 0.0 }
 0x2e9   : > { %v1850_v61 = vsel %vm1849_vm5, %v1775_v58, %v1848_v60 }
 0x2ea   : > { %v1852_v62 = vsel %vm1851_vm6, %v1776_v59, %v1850_v61 }
 0x2eb   : > { %1919 = vmatmul.mubr.f32.vlgmr.msra.gmra.mxu0 %v1852_v62  ;;  %1990 = vmatmul.mubr.f32.vlgmr.msra.gmra.mxu1 %v1852_v62 }
 0x3ab   : > { %v1920_v63 = vpop.f32.mrf.mxu0  ;;  %v1991_v0 = vpop.f32.mrf.mxu1 }
 0x3ad   : > { %v1922_v2 = vpop.f32.mrf.mxu0  ;;  %v1993_v4 = vpop.f32.mrf.mxu1 }
 0x3ae   : > { %v2000_v5 = vcombine.low %v1920_v63, %v1922_v2  ;;  %v2001_v6 = vcombine.low %v1991_v0, %v1993_v4  ;;  %2011 = sbr.rel (%p2900_p1) target bundleno = 1446 (0x5a6), region = 141 }
 0x3b0   : > { %v2004_v8 = vadd.f32 %v2000_v5, %v1841_v1  ;;  %v2005_v9 = vadd.f32 %v2001_v6, %v1842_v3 }
 0x3b2   : > { %2006 = vst [vmem:[#allocation2] sm:$0xff] %v2004_v8  ;;  %2007 = vst [vmem:[#allocation2 + $0x8] sm:$0xff] %v2005_v9 }
 0x3b3   : > { %v2086_v11 = vld [vmem:[#allocation8 + $0x170] sm:$0xff]  ;;  %v2085_v14 = vld [vmem:[#allocation8 + $0x168] sm:$0xff]  ;;  %v2083_v15 = vld [vmem:[#allocation8 + $0x158] sm:$0xff]  ;;  %vm3457_vm7 = vmmov 0  }
 0x3b4   : > { %v2182_v12 = vld [vmem:[#allocation8 + $0x470] sm:$0xff]  ;;  %2255 = vmatprep.subr.mxu0 %v2086_v11  ;;  %v2181_v7 = vld [vmem:[#allocation8 + $0x468] sm:$0xff]  ;;  %v2179_v16 = vld [vmem:[#allocation8 + $0x458] sm:$0xff] }
 0x3b5   : > { %2326 = vmatprep.subr.mxu1 %v2182_v12  ;;  %2256 = vmatpush1.msra.mxu0 %v2085_v14  ;;  %v2082_v17 = vld [vmem:[#allocation8 + $0x150] sm:$0xff]  ;;  %v2080_v20 = vld [vmem:[#allocation8 + $0x140] sm:$0xff]  ;;  %v2079_v23 = vld [vmem:[#allocation8 + $0x138] sm:$0xff] }
 0x3b6   : > { %2327 = vmatpush1.msra.mxu1 %v2181_v7  ;;  %v2178_v18 = vld [vmem:[#allocation8 + $0x450] sm:$0xff]  ;;  %2257 = vmatprep.subr.mxu0 %v2083_v15  ;;  %v2176_v22 = vld [vmem:[#allocation8 + $0x440] sm:$0xff]  ;;  %v2175_v13 = vld [vmem:[#allocation8 + $0x438] sm:$0xff] }
 0x3b7   : > { %2328 = vmatprep.subr.mxu1 %v2179_v16  ;;  %2258 = vmatpush1.msra.mxu0 %v2082_v17  ;;  %v2077_v24 = vld [vmem:[#allocation8 + $0x128] sm:$0xff]  ;;  %v2076_v26 = vld [vmem:[#allocation8 + $0x120] sm:$0xff]  ;;  %v2074_v28 = vld [vmem:[#allocation8 + $0x110] sm:$0xff]  ;;  %v2016_v17 = vlaneseq }
 0x3b8   : > { %2329 = vmatpush1.msra.mxu1 %v2178_v18  ;;  %v2173_v25 = vld [vmem:[#allocation8 + $0x428] sm:$0xff]  ;;  %2259 = vmatprep.subr.mxu0 %v2080_v20  ;;  %v2172_v27 = vld [vmem:[#allocation8 + $0x420] sm:$0xff]  ;;  %v2170_v29 = vld [vmem:[#allocation8 + $0x410] sm:$0xff] }
 0x3b9   : > { %2330 = vmatprep.subr.mxu1 %v2176_v22  ;;  %2260 = vmatpush1.msra.mxu0 %v2079_v23  ;;  %v2073_v30 = vld [vmem:[#allocation8 + $0x108] sm:$0xff]  ;;  %v2071_v31 = vld [vmem:[#allocation8 + $0xf8] sm:$0xff]  ;;  %v2070_v32 = vld [vmem:[#allocation8 + $0xf0] sm:$0xff] }
 0x3ba   : > { %2331 = vmatpush1.msra.mxu1 %v2175_v13  ;;  %2261 = vmatprep.subr.mxu0 %v2077_v24  ;;  %v2169_v19 = vld [vmem:[#allocation8 + $0x408] sm:$0xff]  ;;  %v2167_v10 = vld [vmem:[#allocation8 + $0x3f8] sm:$0xff]  ;;  %v2166_v33 = vld [vmem:[#allocation8 + $0x3f0] sm:$0xff] }
 0x3bb   : > { %2332 = vmatprep.subr.mxu1 %v2173_v25  ;;  %2262 = vmatpush1.msra.mxu0 %v2076_v26  ;;  %v2068_v34 = vld [vmem:[#allocation8 + $0xe0] sm:$0xff]  ;;  %v2067_v36 = vld [vmem:[#allocation8 + $0xd8] sm:$0xff]  ;;  %v2065_v37 = vld [vmem:[#allocation8 + $0xc8] sm:$0xff] }
 0x3bc   : > { %2333 = vmatpush1.msra.mxu1 %v2172_v27  ;;  %2263 = vmatprep.subr.mxu0 %v2074_v28  ;;  %v2164_v35 = vld [vmem:[#allocation8 + $0x3e0] sm:$0xff]  ;;  %v2163_v21 = vld [vmem:[#allocation8 + $0x3d8] sm:$0xff]  ;;  %v2161_v38 = vld [vmem:[#allocation8 + $0x3c8] sm:$0xff]  ;;  %v3829_v27 = vshrl.u32 %v2016_v17, 7 }
 0x3bd   : > { %2334 = vmatprep.subr.mxu1 %v2170_v29  ;;  %2264 = vmatpush1.msra.mxu0 %v2073_v30  ;;  %v2064_v40 = vld [vmem:[#allocation8 + $0xc0] sm:$0xff]  ;;  %v2062_v43 = vld [vmem:[#allocation8 + $0xb0] sm:$0xff]  ;;  %v2061_v45 = vld [vmem:[#allocation8 + $0xa8] sm:$0xff] }
 0x3be   : > { %2335 = vmatpush1.msra.mxu1 %v2169_v19  ;;  %2265 = vmatprep.subr.mxu0 %v2071_v31  ;;  %v2160_v41 = vld [vmem:[#allocation8 + $0x3c0] sm:$0xff]  ;;  %v2158_v44 = vld [vmem:[#allocation8 + $0x3b0] sm:$0xff]  ;;  %v2157_v39 = vld [vmem:[#allocation8 + $0x3a8] sm:$0xff] }
 0x3bf   : > { %2336 = vmatprep.subr.mxu1 %v2167_v10  ;;  %2266 = vmatpush1.msra.mxu0 %v2070_v32  ;;  %v2059_v46 = vld [vmem:[#allocation8 + $0x98] sm:$0xff]  ;;  %v2058_v48 = vld [vmem:[#allocation8 + $0x90] sm:$0xff]  ;;  %v2056_v42 = vld [vmem:[#allocation8 + $0x80] sm:$0xff] }
 0x3c0   : > { %2337 = vmatpush1.msra.mxu1 %v2166_v33  ;;  %2267 = vmatprep.subr.mxu0 %v2068_v34  ;;  %v2155_v47 = vld [vmem:[#allocation8 + $0x398] sm:$0xff]  ;;  %v2154_v49 = vld [vmem:[#allocation8 + $0x390] sm:$0xff]  ;;  %v2152_v50 = vld [vmem:[#allocation8 + $0x380] sm:$0xff]  ;;  %v2018_v34 = vsub.s32 0, %v3829_v27 }
 0x3c1   : > { %2338 = vmatprep.subr.mxu1 %v2164_v35  ;;  %2268 = vmatpush1.msra.mxu0 %v2067_v36  ;;  %v2055_v51 = vld [vmem:[#allocation8 + $0x78] sm:$0xff]  ;;  %v2053_v53 = vld [vmem:[#allocation8 + $0x68] sm:$0xff]  ;;  %v2052_v55 = vld [vmem:[#allocation8 + $0x60] sm:$0xff]  ;;  %v2022_v35 = vsub.s32 1, %v3829_v27 }
 0x3c2   : > { %2339 = vmatpush1.msra.mxu1 %v2163_v21  ;;  %2269 = vmatprep.subr.mxu0 %v2065_v37  ;;  %v2151_v52 = vld [vmem:[#allocation8 + $0x378] sm:$0xff]  ;;  %v2149_v54 = vld [vmem:[#allocation8 + $0x368] sm:$0xff]  ;;  %v2148_v56 = vld [vmem:[#allocation8 + $0x360] sm:$0xff] }
 0x3c3   : > { %2340 = vmatprep.subr.mxu1 %v2161_v38  ;;  %2270 = vmatpush1.msra.mxu0 %v2064_v40  ;;  %v2050_v57 = vld [vmem:[#allocation8 + $0x50] sm:$0xff]  ;;  %v2049_v59 = vld [vmem:[#allocation8 + $0x48] sm:$0xff]  ;;  %v2047_v61 = vld [vmem:[#allocation8 + $0x38] sm:$0xff] }
 0x3c4   : > { %2341 = vmatpush1.msra.mxu1 %v2160_v41  ;;  %2271 = vmatprep.subr.mxu0 %v2062_v43  ;;  %v2146_v58 = vld [vmem:[#allocation8 + $0x350] sm:$0xff]  ;;  %v2145_v60 = vld [vmem:[#allocation8 + $0x348] sm:$0xff]  ;;  %v2143_v62 = vld [vmem:[#allocation8 + $0x338] sm:$0xff]  ;;  %v2026_v41 = vsub.s32 2, %v3829_v27  ;;  %v2030_v43 = vsub.s32 3, %v3829_v27 }
 0x3c5   : > { %2342 = vmatprep.subr.mxu1 %v2158_v44  ;;  %2272 = vmatpush1.msra.mxu0 %v2061_v45  ;;  %v2046_v63 = vld [vmem:[#allocation8 + $0x30] sm:$0xff]  ;;  %v2044_v1 = vld [vmem:[#allocation8 + $0x20] sm:$0xff]  ;;  %v2043_v3 = vld [vmem:[#allocation8 + $0x18] sm:$0xff] }
 0x3c6   : > { %2343 = vmatpush1.msra.mxu1 %v2157_v39  ;;  %2273 = vmatprep.subr.mxu0 %v2059_v46  ;;  %v2142_v0 = vld [vmem:[#allocation8 + $0x330] sm:$0xff]  ;;  %v2140_v2 = vld [vmem:[#allocation8 + $0x320] sm:$0xff]  ;;  %v2139_v4 = vld [vmem:[#allocation8 + $0x318] sm:$0xff] }
 0x3c7   : > { %2344 = vmatprep.subr.mxu1 %v2155_v47  ;;  %2274 = vmatpush1.msra.mxu0 %v2058_v48  ;;  %v2041_v5 = vld [vmem:[#allocation8 + $0x8] sm:$0xff]  ;;  %v2040_v8 = vld [vmem:[#allocation8] sm:$0xff]  ;;  %v2134_v11 = vld [vmem:[#allocation8 + $0x2f0] sm:$0xff] }
 0x3c8   : > { %2345 = vmatpush1.msra.mxu1 %v2154_v49  ;;  %2275 = vmatprep.subr.mxu0 %v2056_v42  ;;  %v2137_v6 = vld [vmem:[#allocation8 + $0x308] sm:$0xff]  ;;  %v2136_v9 = vld [vmem:[#allocation8 + $0x300] sm:$0xff]  ;;  %v2230_v12 = vld [vmem:[#allocation8 + $0x5f0] sm:$0xff] }
 0x3c9   : > { %2346 = vmatprep.subr.mxu1 %v2152_v50  ;;  %2276 = vmatpush1.msra.mxu0 %v2055_v51  ;;  %v2133_v14 = vld [vmem:[#allocation8 + $0x2e8] sm:$0xff]  ;;  %v2131_v15 = vld [vmem:[#allocation8 + $0x2d8] sm:$0xff]  ;;  %v2130_v18 = vld [vmem:[#allocation8 + $0x2d0] sm:$0xff] }
 0x3ca   : > { %2347 = vmatpush1.msra.mxu1 %v2151_v52  ;;  %2277 = vmatprep.subr.mxu0 %v2053_v53  ;;  %v2229_v7 = vld [vmem:[#allocation8 + $0x5e8] sm:$0xff]  ;;  %v2227_v16 = vld [vmem:[#allocation8 + $0x5d8] sm:$0xff]  ;;  %v2226_v20 = vld [vmem:[#allocation8 + $0x5d0] sm:$0xff] }
 0x3cb   : > { %2348 = vmatprep.subr.mxu1 %v2149_v54  ;;  %2278 = vmatpush1.msra.mxu0 %v2052_v55  ;;  %v2128_v22 = vld [vmem:[#allocation8 + $0x2c0] sm:$0xff]  ;;  %v2127_v13 = vld [vmem:[#allocation8 + $0x2b8] sm:$0xff]  ;;  %v2125_v25 = vld [vmem:[#allocation8 + $0x2a8] sm:$0xff] }
 0x3cc   : > { %2349 = vmatpush1.msra.mxu1 %v2148_v56  ;;  %2279 = vmatprep.subr.mxu0 %v2050_v57  ;;  %v2224_v23 = vld [vmem:[#allocation8 + $0x5c0] sm:$0xff]  ;;  %v2223_v24 = vld [vmem:[#allocation8 + $0x5b8] sm:$0xff]  ;;  %v2221_v26 = vld [vmem:[#allocation8 + $0x5a8] sm:$0xff] }
 0x3cd   : > { %2350 = vmatprep.subr.mxu1 %v2146_v58  ;;  %2280 = vmatpush1.msra.mxu0 %v2049_v59  ;;  %v2124_v28 = vld [vmem:[#allocation8 + $0x2a0] sm:$0xff]  ;;  %v2122_v30 = vld [vmem:[#allocation8 + $0x290] sm:$0xff]  ;;  %v2121_v31 = vld [vmem:[#allocation8 + $0x288] sm:$0xff] }
 0x3ce   : > { %2351 = vmatpush1.msra.mxu1 %v2145_v60  ;;  %2281 = vmatprep.subr.mxu0 %v2047_v61  ;;  %v2220_v29 = vld [vmem:[#allocation8 + $0x5a0] sm:$0xff]  ;;  %v2218_v19 = vld [vmem:[#allocation8 + $0x590] sm:$0xff]  ;;  %v2217_v10 = vld [vmem:[#allocation8 + $0x588] sm:$0xff] }
 0x3cf   : > { %2352 = vmatprep.subr.mxu1 %v2143_v62  ;;  %2282 = vmatpush1.msra.mxu0 %v2046_v63  ;;  %v2119_v32 = vld [vmem:[#allocation8 + $0x278] sm:$0xff]  ;;  %v2118_v36 = vld [vmem:[#allocation8 + $0x270] sm:$0xff]  ;;  %v2116_v37 = vld [vmem:[#allocation8 + $0x260] sm:$0xff] }
 0x3d0   : > { %2353 = vmatpush1.msra.mxu1 %v2142_v0  ;;  %2283 = vmatprep.subr.mxu0 %v2044_v1  ;;  %v2215_v33 = vld [vmem:[#allocation8 + $0x578] sm:$0xff]  ;;  %v2214_v21 = vld [vmem:[#allocation8 + $0x570] sm:$0xff]  ;;  %v2212_v38 = vld [vmem:[#allocation8 + $0x560] sm:$0xff] }
 0x3d1   : > { %2354 = vmatprep.subr.mxu1 %v2140_v2  ;;  %2284 = vmatpush1.msra.mxu0 %v2043_v3  ;;  %v2014_v40 = vld [vmem:[%s3950_s8] sm:$0xf]  ;;  %v2115_v44 = vld [vmem:[#allocation8 + $0x258] sm:$0xff]  ;;  %v2112_v49 = vld [vmem:[#allocation8 + $0x240] sm:$0xff] }
 0x3d2   : > { %2355 = vmatpush1.msra.mxu1 %v2139_v4  ;;  %2285 = vmatprep.subr.mxu0 %v2041_v5  ;;  %v2211_v45 = vld [vmem:[#allocation8 + $0x558] sm:$0xff]  ;;  %v2113_v39 = vld [vmem:[#allocation8 + $0x248] sm:$0xff]  ;;  %v2019_v47 = vrot.slane %v2014_v40, %v2018_v34  ;;  %v2023_v48 = vrot.slane %v2014_v40, %v2022_v35  ;;  %v2208_v42 = vld [vmem:[#allocation8 + $0x540] sm:$0xff]  ;;  %v2027_v52 = vrot.slane %v2014_v40, %v2026_v41 }
 0x3d3   : > { %2356 = vmatprep.subr.mxu1 %v2137_v6  ;;  %2286 = vmatpush1.msra.mxu0 %v2040_v8  ;;  %v2209_v46 = vld [vmem:[#allocation8 + $0x548] sm:$0xff]  ;;  %v2110_v50 = vld [vmem:[#allocation8 + $0x230] sm:$0xff]  ;;  %v2031_v53 = vrot.slane %v2014_v40, %v2030_v43  ;;  %v2107_v56 = vld [vmem:[#allocation8 + $0x218] sm:$0xff] }
 0x3d4   : > { %2357 = vmatpush1.msra.mxu1 %v2136_v9  ;;  %2287 = vmatprep.subr.mxu0 %v2134_v11  ;;  %v2206_v51 = vld [vmem:[#allocation8 + $0x530] sm:$0xff]  ;;  %v2109_v54 = vld [vmem:[#allocation8 + $0x228] sm:$0xff]  ;;  %v2203_v57 = vld [vmem:[#allocation8 + $0x518] sm:$0xff]  ;;  %v2032_v58 = vcombine.low %v2019_v47, %v2023_v48 }
 0x3d5   : > { %2358 = vmatprep.subr.mxu1 %v2230_v12  ;;  %2288 = vmatpush2.msra.mxu0 %v2133_v14  ;;  %v2205_v55 = vld [vmem:[#allocation8 + $0x528] sm:$0xff]  ;;  %v2106_v59 = vld [vmem:[#allocation8 + $0x210] sm:$0xff]  ;;  %v2104_v62 = vld [vmem:[#allocation8 + $0x200] sm:$0xff]  ;;  %v2033_v0 = vcombine.low %v2027_v52, %v2031_v53 }
 0x3d6   : > { %2359 = vmatpush2.msra.mxu1 %v2229_v7  ;;  %2289 = vmatprep.subr.mxu0 %v2131_v15  ;;  %v2202_v60 = vld [vmem:[#allocation8 + $0x510] sm:$0xff]  ;;  %v2200_v63 = vld [vmem:[#allocation8 + $0x500] sm:$0xff]  ;;  %v2103_v1 = vld [vmem:[#allocation8 + $0x1f8] sm:$0xff] }
 0x3d7   : > { %2360 = vmatprep.subr.mxu1 %v2227_v16  ;;  %2290 = vmatpush2.msra.mxu0 %v2130_v18  ;;  %v2012_v61 = vld [vmem:[#allocation2] sm:$0xff]  ;;  %v2199_v2 = vld [vmem:[#allocation8 + $0x4f8] sm:$0xff]  ;;  %v2100_v8 = vld [vmem:[#allocation8 + $0x1e0] sm:$0xff] }
 0x3d8   : > { %2361 = vmatpush2.msra.mxu1 %v2226_v20  ;;  %2291 = vmatprep.subr.mxu0 %v2128_v22  ;;  %v2013_v3 = vld [vmem:[#allocation2 + $0x8] sm:$0xff]  ;;  %v2101_v4 = vld [vmem:[#allocation8 + $0x1e8] sm:$0xff]  ;;  %v2036_v6 = vadd.f32 %v2032_v58, %v2012_v61  ;;  %v2196_v9 = vld [vmem:[#allocation8 + $0x4e0] sm:$0xff] }
 0x3d9   : > { %2362 = vmatprep.subr.mxu1 %v2224_v23  ;;  %2292 = vmatpush2.msra.mxu0 %v2127_v13  ;;  %v2197_v5 = vld [vmem:[#allocation8 + $0x4e8] sm:$0xff]  ;;  %v2098_v11 = vld [vmem:[#allocation8 + $0x1d0] sm:$0xff]  ;;  %v2037_v14 = vadd.f32 %v2033_v0, %v2013_v3  ;;  %v2095_v16 = vld [vmem:[#allocation8 + $0x1b8] sm:$0xff] }
 0x3da   : > { %2363 = vmatpush2.msra.mxu1 %v2223_v24  ;;  %2293 = vmatprep.subr.mxu0 %v2125_v25  ;;  %v2194_v12 = vld [vmem:[#allocation8 + $0x4d0] sm:$0xff]  ;;  %v2097_v7 = vld [vmem:[#allocation8 + $0x1c8] sm:$0xff]  ;;  %v2191_v17 = vld [vmem:[#allocation8 + $0x4b8] sm:$0xff]  ;;  %v3844_v18 = vmax.f32 %v2036_v6, 0.0 }
 0x3db   : > { %2364 = vmatprep.subr.mxu1 %v2221_v26  ;;  %2294 = vmatpush2.msra.mxu0 %v2124_v28  ;;  %v2193_v15 = vld [vmem:[#allocation8 + $0x4c8] sm:$0xff]  ;;  %v2094_v20 = vld [vmem:[#allocation8 + $0x1b0] sm:$0xff]  ;;  %v2092_v23 = vld [vmem:[#allocation8 + $0x1a0] sm:$0xff]  ;;  %v3846_v24 = vmax.f32 %v2037_v14, 0.0 }
 0x3dc   : > { %2365 = vmatpush2.msra.mxu1 %v2220_v29  ;;  %2295 = vmatprep.subr.mxu0 %v2122_v30  ;;  %v2190_v22 = vld [vmem:[#allocation8 + $0x4b0] sm:$0xff]  ;;  %v2188_v13 = vld [vmem:[#allocation8 + $0x4a0] sm:$0xff]  ;;  %v2091_v25 = vld [vmem:[#allocation8 + $0x198] sm:$0xff]  ;;  %v3850_v30 = vcombine.high %v3844_v18, %v3844_v18 }
 0x3dd   : > { %2366 = vmatprep.subr.mxu1 %v2218_v19  ;;  %2296 = vmatpush2.msra.mxu0 %v2121_v31  ;;  %v2187_v26 = vld [vmem:[#allocation8 + $0x498] sm:$0xff]  ;;  %v2089_v28 = vld [vmem:[#allocation8 + $0x188] sm:$0xff]  ;;  %v2088_v19 = vld [vmem:[#allocation8 + $0x180] sm:$0xff] }
 0x3de   : > { %2367 = vmatpush2.msra.mxu1 %v2217_v10  ;;  %2297 = vmatprep.subr.mxu0 %v2119_v32  ;;  %v2185_v29 = vld [vmem:[#allocation8 + $0x488] sm:$0xff]  ;;  %v2184_v31 = vld [vmem:[#allocation8 + $0x480] sm:$0xff]  ;;  %v3854_v10 = vcombine.high %v3846_v24, %v3846_v24  ;;  %v2135_v32 = vld [vmem:[#allocation8 + $0x2f8] sm:$0xff] }
 0x3df   : > { %2368 = vmatprep.subr.mxu1 %v2215_v33  ;;  %2298 = vmatpush2.msra.mxu0 %v2118_v36  ;;  %v2231_v33 = vld [vmem:[#allocation8 + $0x5f8] sm:$0xff]  ;;  %v2084_v40 = vld [vmem:[#allocation8 + $0x160] sm:$0xff]  ;;  %v2126_v47 = vld [vmem:[#allocation8 + $0x2b0] sm:$0xff] }
 0x3e0   : > { %2369 = vmatpush2.msra.mxu1 %v2214_v21  ;;  %2299 = vmatprep.subr.mxu0 %v2116_v37  ;;  %v2087_v36 = vld [vmem:[#allocation8 + $0x178] sm:$0xff]  ;;  %v2132_v37 = vld [vmem:[#allocation8 + $0x2e0] sm:$0xff]  ;;  %v2222_v48 = vld [vmem:[#allocation8 + $0x5b0] sm:$0xff] }
 0x3e1   : > { %2370 = vmatprep.subr.mxu1 %v2212_v38  ;;  %2300 = vmatpush2.msra.mxu0 %v2115_v44  ;;  %v2183_v21 = vld [vmem:[#allocation8 + $0x478] sm:$0xff]  ;;  %v2228_v38 = vld [vmem:[#allocation8 + $0x5e0] sm:$0xff]  ;;  %v2129_v44 = vld [vmem:[#allocation8 + $0x2c8] sm:$0xff] }
 0x3e2   : > { %2371 = vmatpush2.msra.mxu1 %v2211_v45  ;;  %2301 = vmatprep.subr.mxu0 %v2113_v39  ;;  %v2180_v43 = vld [vmem:[#allocation8 + $0x460] sm:$0xff]  ;;  %v2225_v45 = vld [vmem:[#allocation8 + $0x5c8] sm:$0xff]  ;;  %v2075_v52 = vld [vmem:[#allocation8 + $0x118] sm:$0xff] }
 0x3e3   : > { %2372 = vmatprep.subr.mxu1 %v2209_v46  ;;  %2302 = vmatpush2.msra.mxu0 %v2112_v49  ;;  %v2081_v39 = vld [vmem:[#allocation8 + $0x148] sm:$0xff]  ;;  %v2078_v49 = vld [vmem:[#allocation8 + $0x130] sm:$0xff]  ;;  %v2171_v53 = vld [vmem:[#allocation8 + $0x418] sm:$0xff] }
 0x3e4   : > { %2373 = vmatpush2.msra.mxu1 %v2208_v42  ;;  %2303 = vmatprep.subr.mxu0 %v2110_v50  ;;  %v2177_v46 = vld [vmem:[#allocation8 + $0x448] sm:$0xff]  ;;  %v2174_v42 = vld [vmem:[#allocation8 + $0x430] sm:$0xff]  ;;  %v2123_v50 = vld [vmem:[#allocation8 + $0x298] sm:$0xff] }
 0x3e5   : > { %2374 = vmatprep.subr.mxu1 %v2206_v51  ;;  %2304 = vmatpush2.msra.mxu0 %v2109_v54  ;;  %v2219_v51 = vld [vmem:[#allocation8 + $0x598] sm:$0xff]  ;;  %v2120_v54 = vld [vmem:[#allocation8 + $0x280] sm:$0xff]  ;;  %v2117_v58 = vld [vmem:[#allocation8 + $0x268] sm:$0xff] }
 0x3e6   : > { %2375 = vmatpush2.msra.mxu1 %v2205_v55  ;;  %2305 = vmatprep.subr.mxu0 %v2107_v56  ;;  %v2216_v55 = vld [vmem:[#allocation8 + $0x580] sm:$0xff]  ;;  %v2165_v61 = vld [vmem:[#allocation8 + $0x3e8] sm:$0xff]  ;;  %v2066_v0 = vld [vmem:[#allocation8 + $0xd0] sm:$0xff] }
 0x3e7   : > { %2376 = vmatprep.subr.mxu1 %v2203_v57  ;;  %2306 = vmatpush2.msra.mxu0 %v2106_v59  ;;  %v2072_v56 = vld [vmem:[#allocation8 + $0x100] sm:$0xff]  ;;  %v2213_v59 = vld [vmem:[#allocation8 + $0x568] sm:$0xff]  ;;  %v2207_v3 = vld [vmem:[#allocation8 + $0x538] sm:$0xff] }
 0x3e8   : > { %2377 = vmatpush2.msra.mxu1 %v2202_v60  ;;  %2307 = vmatprep.subr.mxu0 %v2104_v62  ;;  %v2168_v57 = vld [vmem:[#allocation8 + $0x400] sm:$0xff]  ;;  %v2069_v60 = vld [vmem:[#allocation8 + $0xe8] sm:$0xff]  ;;  %v2114_v62 = vld [vmem:[#allocation8 + $0x250] sm:$0xff] }
 0x3e9   : > { %2378 = vmatprep.subr.mxu1 %v2200_v63  ;;  %2308 = vmatpush2.msra.mxu0 %v2103_v1  ;;  %v2210_v63 = vld [vmem:[#allocation8 + $0x550] sm:$0xff]  ;;  %v2108_v6 = vld [vmem:[#allocation8 + $0x220] sm:$0xff]  ;;  %v2201_v14 = vld [vmem:[#allocation8 + $0x508] sm:$0xff] }
 0x3ea   : > { %2379 = vmatpush2.msra.mxu1 %v2199_v2  ;;  %2309 = vmatprep.subr.mxu0 %v2101_v4  ;;  %v2162_v1 = vld [vmem:[#allocation8 + $0x3d0] sm:$0xff]  ;;  %v2111_v2 = vld [vmem:[#allocation8 + $0x238] sm:$0xff] }
 0x3eb   : > { %2380 = vmatprep.subr.mxu1 %v2197_v5  ;;  %2310 = vmatpush2.msra.mxu0 %v2100_v8  ;;  %v2063_v4 = vld [vmem:[#allocation8 + $0xb8] sm:$0xff]  ;;  %v2204_v8 = vld [vmem:[#allocation8 + $0x520] sm:$0xff] }
 0x3ec   : > { %2381 = vmatpush2.msra.mxu1 %v2196_v9  ;;  %2311 = vmatprep.subr.mxu0 %v2098_v11  ;;  %v2159_v5 = vld [vmem:[#allocation8 + $0x3b8] sm:$0xff]  ;;  %v2060_v9 = vld [vmem:[#allocation8 + $0xa0] sm:$0xff] }
 0x3ed   : > { %2382 = vmatprep.subr.mxu1 %v2194_v12  ;;  %2312 = vmatpush2.msra.mxu0 %v2097_v7  ;;  %v2156_v11 = vld [vmem:[#allocation8 + $0x3a0] sm:$0xff]  ;;  %v2105_v12 = vld [vmem:[#allocation8 + $0x208] sm:$0xff] }
 0x3ee   : > { %2383 = vmatpush2.msra.mxu1 %v2193_v15  ;;  %2313 = vmatprep.subr.mxu0 %v2095_v16  ;;  %v2057_v7 = vld [vmem:[#allocation8 + $0x88] sm:$0xff]  ;;  %v2102_v16 = vld [vmem:[#allocation8 + $0x1f0] sm:$0xff] }
 0x3ef   : > { %2384 = vmatprep.subr.mxu1 %v2191_v17  ;;  %2314 = vmatpush2.msra.mxu0 %v2094_v20  ;;  %v2153_v15 = vld [vmem:[#allocation8 + $0x388] sm:$0xff]  ;;  %v2198_v17 = vld [vmem:[#allocation8 + $0x4f0] sm:$0xff] }
 0x3f0   : > { %2385 = vmatpush2.msra.mxu1 %v2190_v22  ;;  %2315 = vmatprep.subr.mxu0 %v2092_v23  ;;  %v2054_v20 = vld [vmem:[#allocation8 + $0x70] sm:$0xff]  ;;  %v2099_v23 = vld [vmem:[#allocation8 + $0x1d8] sm:$0xff] }
 0x3f1   : > { %2386 = vmatprep.subr.mxu1 %v2188_v13  ;;  %2316 = vmatpush2.msra.mxu0 %v2091_v25  ;;  %v2150_v22 = vld [vmem:[#allocation8 + $0x370] sm:$0xff]  ;;  %v2195_v13 = vld [vmem:[#allocation8 + $0x4d8] sm:$0xff] }
 0x3f2   : > { %2387 = vmatpush2.msra.mxu1 %v2187_v26  ;;  %2317 = vmatprep.subr.mxu0 %v2089_v28  ;;  %v2051_v25 = vld [vmem:[#allocation8 + $0x58] sm:$0xff]  ;;  %v2096_v28 = vld [vmem:[#allocation8 + $0x1c0] sm:$0xff] }
 0x3f3   : > { %2388 = vmatprep.subr.mxu1 %v2185_v29  ;;  %2318 = vmatpush2.msra.mxu0 %v2088_v19  ;;  %v2147_v26 = vld [vmem:[#allocation8 + $0x358] sm:$0xff]  ;;  %v2192_v29 = vld [vmem:[#allocation8 + $0x4c0] sm:$0xff] }
 0x3f4   : > { %2319 = vmatprep.mubr.f32.mxu0 %v3850_v30  ;;  %2389 = vmatpush2.msra.mxu1 %v2184_v31  ;;  %v2048_v19 = vld [vmem:[#allocation8 + $0x40] sm:$0xff] }
 0x3f5   : > { %2320 = vmatmul.mubr.f32.vlgmr.msra.gmra.mxu0 %v3844_v18  ;;  %2390 = vmatprep.mubr.f32.mxu1 %v3854_v10  ;;  %v2144_v31 = vld [vmem:[#allocation8 + $0x340] sm:$0xff] }
 0x3f6   : > { %2952 = vmatprep.subr.mxu0 %v2135_v32  ;;  %2987 = vmatprep.subr.mxu1 %v2231_v33  ;;  %v2093_v32 = vld [vmem:[#allocation8 + $0x1a8] sm:$0xff] }
 0x3f7   : > { %2391 = vmatmul.mubr.f32.vlgmr.msra.gmra.mxu1 %v3846_v24  ;;  %2953 = vmatpush3.msra.mxu0 %v2087_v36  ;;  %v2189_v33 = vld [vmem:[#allocation8 + $0x4a8] sm:$0xff] }
 0x3f8   : > { %2988 = vmatpush3.msra.mxu1 %v2183_v21  ;;  %2954 = vmatprep.subr.mxu0 %v2132_v37  ;;  %v2045_v36 = vld [vmem:[#allocation8 + $0x28] sm:$0xff]  ;;  %v2090_v37 = vld [vmem:[#allocation8 + $0x190] sm:$0xff] }
 0x3f9   : > { %2989 = vmatprep.subr.mxu1 %v2228_v38  ;;  %2955 = vmatpush3.msra.mxu0 %v2084_v40  ;;  %v2141_v21 = vld [vmem:[#allocation8 + $0x328] sm:$0xff]  ;;  %v2186_v38 = vld [vmem:[#allocation8 + $0x490] sm:$0xff] }
 0x3fa   : > { %2990 = vmatpush3.msra.mxu1 %v2180_v43  ;;  %2956 = vmatprep.subr.mxu0 %v2129_v44  ;;  %v2042_v40 = vld [vmem:[#allocation8 + $0x10] sm:$0xff]  ;;  %v2571_v44 = vld [vmem:[#allocation10 + $0xf8] sm:$0xff] }
 0x3fb   : > { %2991 = vmatprep.subr.mxu1 %v2225_v45  ;;  %2957 = vmatpush3.msra.mxu0 %v2081_v39  ;;  %v2138_v43 = vld [vmem:[#allocation8 + $0x310] sm:$0xff]  ;;  %v2555_v45 = vld [vmem:[#allocation10 + $0x78] sm:$0xff] }
 0x3fc   : > { %2992 = vmatpush3.msra.mxu1 %v2177_v46  ;;  %2958 = vmatprep.subr.mxu0 %v2126_v47  ;;  %v2570_v39 = vld [vmem:[#allocation10 + $0xf0] sm:$0xff]  ;;  %v2569_v47 = vld [vmem:[#allocation10 + $0xe8] sm:$0xff] }
 0x3fd   : > { %2993 = vmatprep.subr.mxu1 %v2222_v48  ;;  %2959 = vmatpush3.msra.mxu0 %v2078_v49  ;;  %v2554_v46 = vld [vmem:[#allocation10 + $0x70] sm:$0xff]  ;;  %v2553_v48 = vld [vmem:[#allocation10 + $0x68] sm:$0xff]  ;;  %v2568_v49 = vld [vmem:[#allocation10 + $0xe0] sm:$0xff] }
 0x3fe   : > { %2994 = vmatpush3.msra.mxu1 %v2174_v42  ;;  %2960 = vmatprep.subr.mxu0 %v2123_v50  ;;  %v2567_v42 = vld [vmem:[#allocation10 + $0xd8] sm:$0xff]  ;;  %v2566_v50 = vld [vmem:[#allocation10 + $0xd0] sm:$0xff] }
 0x3ff   : > { %2995 = vmatprep.subr.mxu1 %v2219_v51  ;;  %2961 = vmatpush3.msra.mxu0 %v2075_v52  ;;  %v2549_v51 = vld [vmem:[#allocation10 + $0x48] sm:$0xff]  ;;  %v2564_v52 = vld [vmem:[#allocation10 + $0xc0] sm:$0xff] }
 0x400   : > { %2996 = vmatpush3.msra.mxu1 %v2171_v53  ;;  %2962 = vmatprep.subr.mxu0 %v2120_v54  ;;  %v2548_v53 = vld [vmem:[#allocation10 + $0x40] sm:$0xff]  ;;  %v2563_v54 = vld [vmem:[#allocation10 + $0xb8] sm:$0xff] }
 0x401   : > { %2997 = vmatprep.subr.mxu1 %v2216_v55  ;;  %2963 = vmatpush3.msra.mxu0 %v2072_v56  ;;  %v2547_v55 = vld [vmem:[#allocation10 + $0x38] sm:$0xff]  ;;  %v2562_v56 = vld [vmem:[#allocation10 + $0xb0] sm:$0xff] }
 0x402   : > { %2998 = vmatpush3.msra.mxu1 %v2168_v57  ;;  %2964 = vmatprep.subr.mxu0 %v2117_v58  ;;  %v2546_v57 = vld [vmem:[#allocation10 + $0x30] sm:$0xff]  ;;  %v2561_v58 = vld [vmem:[#allocation10 + $0xa8] sm:$0xff] }
 0x403   : > { %2999 = vmatprep.subr.mxu1 %v2213_v59  ;;  %2965 = vmatpush3.msra.mxu0 %v2069_v60  ;;  %v2545_v59 = vld [vmem:[#allocation10 + $0x28] sm:$0xff]  ;;  %v2560_v60 = vld [vmem:[#allocation10 + $0xa0] sm:$0xff] }
 0x404   : > { %3000 = vmatpush3.msra.mxu1 %v2165_v61  ;;  %2966 = vmatprep.subr.mxu0 %v2114_v62  ;;  %v2544_v61 = vld [vmem:[#allocation10 + $0x20] sm:$0xff]  ;;  %v2559_v62 = vld [vmem:[#allocation10 + $0x98] sm:$0xff] }
 0x405   : > { %3001 = vmatprep.subr.mxu1 %v2210_v63  ;;  %2967 = vmatpush3.msra.mxu0 %v2066_v0  ;;  %v2543_v63 = vld [vmem:[#allocation10 + $0x18] sm:$0xff]  ;;  %v2558_v0 = vld [vmem:[#allocation10 + $0x90] sm:$0xff] }
 0x406   : > { %3002 = vmatpush3.msra.mxu1 %v2162_v1  ;;  %2968 = vmatprep.subr.mxu0 %v2111_v2  ;;  %v2542_v1 = vld [vmem:[#allocation10 + $0x10] sm:$0xff]  ;;  %v2557_v2 = vld [vmem:[#allocation10 + $0x88] sm:$0xff] }
 0x407   : > { %3003 = vmatprep.subr.mxu1 %v2207_v3  ;;  %2969 = vmatpush3.msra.mxu0 %v2063_v4  ;;  %v2541_v3 = vld [vmem:[#allocation10 + $0x8] sm:$0xff]  ;;  %v2556_v4 = vld [vmem:[#allocation10 + $0x80] sm:$0xff] }
 0x408   : > { %3004 = vmatpush3.msra.mxu1 %v2159_v5  ;;  %2970 = vmatprep.subr.mxu0 %v2108_v6  ;;  %v2540_v5 = vld [vmem:[#allocation10] sm:$0xff]  ;;  %v2587_v6 = vld [vmem:[#allocation10 + $0x178] sm:$0xff] }
 0x409   : > { %3005 = vmatprep.subr.mxu1 %v2204_v8  ;;  %2971 = vmatpush3.msra.mxu0 %v2060_v9  ;;  %v3456_v8 = vmov 0.0   ;;  %v2586_v9 = vld [vmem:[#allocation10 + $0x170] sm:$0xff] }
 0x40a   : > { %3006 = vmatpush3.msra.mxu1 %v2156_v11  ;;  %2972 = vmatprep.subr.mxu0 %v2105_v12  ;;  %v2585_v11 = vld [vmem:[#allocation10 + $0x168] sm:$0xff]  ;;  %v2584_v12 = vld [vmem:[#allocation10 + $0x160] sm:$0xff] }
 0x40b   : > { %3007 = vmatprep.subr.mxu1 %v2201_v14  ;;  %2973 = vmatpush3.msra.mxu0 %v2057_v7  ;;  %v2583_v14 = vld [vmem:[#allocation10 + $0x158] sm:$0xff]  ;;  %v2582_v7 = vld [vmem:[#allocation10 + $0x150] sm:$0xff] }
 0x40c   : > { %3008 = vmatpush3.msra.mxu1 %v2153_v15  ;;  %2974 = vmatprep.subr.mxu0 %v2102_v16  ;;  %v2581_v15 = vld [vmem:[#allocation10 + $0x148] sm:$0xff]  ;;  %v2580_v16 = vld [vmem:[#allocation10 + $0x140] sm:$0xff] }
 0x40d   : > { %3009 = vmatprep.subr.mxu1 %v2198_v17  ;;  %2975 = vmatpush3.msra.mxu0 %v2054_v20  ;;  %v2579_v17 = vld [vmem:[#allocation10 + $0x138] sm:$0xff]  ;;  %v2578_v20 = vld [vmem:[#allocation10 + $0x130] sm:$0xff] }
 0x40e   : > { %3010 = vmatpush3.msra.mxu1 %v2150_v22  ;;  %2976 = vmatprep.subr.mxu0 %v2099_v23  ;;  %v2577_v22 = vld [vmem:[#allocation10 + $0x128] sm:$0xff]  ;;  %v2576_v23 = vld [vmem:[#allocation10 + $0x120] sm:$0xff] }
 0x40f   : > { %3011 = vmatprep.subr.mxu1 %v2195_v13  ;;  %2977 = vmatpush3.msra.mxu0 %v2051_v25  ;;  %v2575_v13 = vld [vmem:[#allocation10 + $0x118] sm:$0xff]  ;;  %v2574_v25 = vld [vmem:[#allocation10 + $0x110] sm:$0xff] }
 0x410   : > { %3012 = vmatpush3.msra.mxu1 %v2147_v26  ;;  %2978 = vmatprep.subr.mxu0 %v2096_v28  ;;  %v2573_v26 = vld [vmem:[#allocation10 + $0x108] sm:$0xff]  ;;  %v2572_v28 = vld [vmem:[#allocation10 + $0x100] sm:$0xff] }
 0x411   : > { %3013 = vmatprep.subr.mxu1 %v2192_v29  ;;  %2979 = vmatpush3.msra.mxu0 %v2048_v19  ;;  %v2232_v29 = vld [vmem:[%s3951_s30] sm:$0x7] }
 0x412   : > { %3014 = vmatpush3.msra.mxu1 %v2144_v31  ;;  %2980 = vmatprep.subr.mxu0 %v2093_v32  ;;  %v2237_v19 = vrot.slane %v2232_v29, %v2018_v34  ;;  %v2241_v31 = vrot.slane %v2232_v29, %v2022_v35  ;;  %v2245_v34 = vrot.slane %v2232_v29, %v2026_v41 }
 0x413   : > { %3015 = vmatprep.subr.mxu1 %v2189_v33  ;;  %2981 = vmatpush3.msra.mxu0 %v2045_v36 }
 0x414   : > { %3016 = vmatpush3.msra.mxu1 %v2141_v21  ;;  %2982 = vmatprep.subr.mxu0 %v2090_v37 }
 0x415   : > { %3017 = vmatprep.subr.mxu1 %v2186_v38  ;;  %2983 = vmatpush3.msra.mxu0 %v2042_v40 }
 0x416   : > { %2461 = vmatprep.mubr.f32.mxu0 %v3850_v30  ;;  %3018 = vmatpush3.msra.mxu1 %v2138_v43  ;;  %v2552_v30 = vld [vmem:[#allocation10 + $0x60] sm:$0xff] }
 0x417   : > { %2531 = vmatprep.mubr.f32.mxu1 %v3854_v10  ;;  %2462 = vmatmul.mubr.f32.vlgmr.msra.gmra.mxu0 %v3844_v18  ;;  %v2551_v10 = vld [vmem:[#allocation10 + $0x58] sm:$0xff]  ;;  %v2550_v18 = vld [vmem:[#allocation10 + $0x50] sm:$0xff] }
 0x418   : > { %2532 = vmatmul.mubr.f32.vlgmr.msra.gmra.mxu1 %v3846_v24  ;;  %3022 = vmatprep.subr.mxu0 %v2571_v44  ;;  %v2565_v24 = vld [vmem:[#allocation10 + $0xc8] sm:$0xff] }
 0x419   : > { %3023 = vmatpush3.msra.mxu0 %v2555_v45  ;;  %3154 = vmatprep.subr.mxu1 %v3456_v8 }
 0x41a   : > { %3024 = vmatprep.subr.mxu0 %v2570_v39  ;;  %3155 = vmatpush3.msra.mxu1 %v2587_v6 }
 0x41b   : > { %3025 = vmatpush3.msra.mxu0 %v2554_v46  ;;  %3156 = vmatprep.subr.mxu1 %v3456_v8 }
 0x41c   : > { %3026 = vmatprep.subr.mxu0 %v2569_v47  ;;  %3157 = vmatpush3.msra.mxu1 %v2586_v9 }
 0x41d   : > { %3027 = vmatpush3.msra.mxu0 %v2553_v48  ;;  %3158 = vmatprep.subr.mxu1 %v3456_v8 }
 0x41e   : > { %3028 = vmatprep.subr.mxu0 %v2568_v49  ;;  %3159 = vmatpush3.msra.mxu1 %v2585_v11 }
 0x41f   : > { %3029 = vmatpush3.msra.mxu0 %v2552_v30  ;;  %3160 = vmatprep.subr.mxu1 %v3456_v8 }
 0x420   : > { %3030 = vmatprep.subr.mxu0 %v2567_v42  ;;  %3161 = vmatpush3.msra.mxu1 %v2584_v12 }
 0x421   : > { %3031 = vmatpush3.msra.mxu0 %v2551_v10  ;;  %3162 = vmatprep.subr.mxu1 %v3456_v8 }
 0x422   : > { %3032 = vmatprep.subr.mxu0 %v2566_v50  ;;  %3163 = vmatpush3.msra.mxu1 %v2583_v14 }
 0x423   : > { %3033 = vmatpush3.msra.mxu0 %v2550_v18  ;;  %3164 = vmatprep.subr.mxu1 %v3456_v8 }
 0x424   : > { %3034 = vmatprep.subr.mxu0 %v2565_v24  ;;  %3165 = vmatpush3.msra.mxu1 %v2582_v7 }
 0x425   : > { %3035 = vmatpush3.msra.mxu0 %v2549_v51  ;;  %3166 = vmatprep.subr.mxu1 %v3456_v8  ;;  %v2901_v51 = vld [vmem:[%s3952_s20] ss:$0 sm:$0xff] }
 0x426   : > { %3036 = vmatprep.subr.mxu0 %v2564_v52  ;;  %3167 = vmatpush3.msra.mxu1 %v2581_v15 }
 0x427   : > { %3037 = vmatpush3.msra.mxu0 %v2548_v53  ;;  %3168 = vmatprep.subr.mxu1 %v3456_v8 }
 0x428   : > { %3038 = vmatprep.subr.mxu0 %v2563_v54  ;;  %3169 = vmatpush3.msra.mxu1 %v2580_v16 }
 0x429   : > { %3039 = vmatpush3.msra.mxu0 %v2547_v55  ;;  %3170 = vmatprep.subr.mxu1 %v3456_v8 }
 0x42a   : > { %3040 = vmatprep.subr.mxu0 %v2562_v56  ;;  %3171 = vmatpush3.msra.mxu1 %v2579_v17 }
 0x42b   : > { %3041 = vmatpush3.msra.mxu0 %v2546_v57  ;;  %3172 = vmatprep.subr.mxu1 %v3456_v8 }
 0x42c   : > { %3042 = vmatprep.subr.mxu0 %v2561_v58  ;;  %3173 = vmatpush3.msra.mxu1 %v2578_v20 }
 0x42d   : > { %3043 = vmatpush3.msra.mxu0 %v2545_v59  ;;  %3174 = vmatprep.subr.mxu1 %v3456_v8 }
 0x42e   : > { %3044 = vmatprep.subr.mxu0 %v2560_v60  ;;  %3175 = vmatpush3.msra.mxu1 %v2577_v22 }
 0x42f   : > { %3045 = vmatpush3.msra.mxu0 %v2544_v61  ;;  %3176 = vmatprep.subr.mxu1 %v3456_v8 }
 0x430   : > { %3046 = vmatprep.subr.mxu0 %v2559_v62  ;;  %3177 = vmatpush3.msra.mxu1 %v2576_v23 }
 0x431   : > { %3047 = vmatpush3.msra.mxu0 %v2543_v63  ;;  %3178 = vmatprep.subr.mxu1 %v3456_v8 }
 0x432   : > { %3048 = vmatprep.subr.mxu0 %v2558_v0  ;;  %3179 = vmatpush3.msra.mxu1 %v2575_v13 }
 0x433   : > { %3049 = vmatpush3.msra.mxu0 %v2542_v1  ;;  %3180 = vmatprep.subr.mxu1 %v3456_v8 }
 0x434   : > { %3050 = vmatprep.subr.mxu0 %v2557_v2  ;;  %3181 = vmatpush3.msra.mxu1 %v2574_v25 }
 0x435   : > { %3051 = vmatpush3.msra.mxu0 %v2541_v3  ;;  %3182 = vmatprep.subr.mxu1 %v3456_v8 }
 0x436   : > { %3052 = vmatprep.subr.mxu0 %v2556_v4  ;;  %3183 = vmatpush3.msra.mxu1 %v2573_v26 }
 0x437   : > { %3053 = vmatpush3.msra.mxu0 %v2540_v5  ;;  %3184 = vmatprep.subr.mxu1 %v3456_v8 }
 0x438   : > { %3185 = vmatpush3.msra.mxu1 %v2572_v28  ;;  %3186 = vmatprep.mubr.msk.f32.mxu1 %vm3457_vm7, %v3456_v8 }
 0x4b5   : > { %v2321_v32 = vpop.f32.mrf.mxu0 }
 0x4b6   : > { %v2322_v33 = vadd.f32 %v2321_v32, %v2237_v19 }
 0x4b7   : > { %v2392_v36 = vpop.f32.mrf.mxu1  ;;  %v2323_v21 = vpop.f32.mrf.mxu0 }
 0x4b8   : > { %v2324_v37 = vadd.f32 %v2323_v21, %v2241_v31  ;;  %v2393_v38 = vadd.f32 %v2392_v36, %v2322_v33 }
 0x4b9   : > { %v2394_v40 = vpop.f32.mrf.mxu1 }
 0x4ba   : > { %v2395_v43 = vadd.f32 %v2394_v40, %v2324_v37  ;;  %v2537_v45 = vmax.f32 %v2393_v38, 0.0 }
 0x4bc   : > { %v2538_v44 = vmax.f32 %v2395_v43, 0.0 }
 0x4be   : > { %2659 = vmatprep.mubr.f32.mxu0 %v2538_v44 }
 0x4bf   : > { %2660 = vmatmul.mubr.f32.vlgmr.msra.gmra.mxu0 %v2537_v45 }
 0x4d7   : > { %v2984_v39 = vpop.f32.mrf.mxu0 }
 0x4d8   : > { %v3019_v46 = vpop.f32.mrf.mxu1 }
 0x4d9   : > { %v2985_v47 = vpop.f32.mrf.mxu0 }
 0x4da   : > { %v3020_v48 = vpop.f32.mrf.mxu1  ;;  %v2986_v35 = vadd.f32 %v2985_v47, %v2984_v39 }
 0x4db   : > { %v3021_v30 = vadd.f32 %v3020_v48, %v3019_v46 }
 0x4dc   : > { %v2464_v49 = vadd.f32 %v2986_v35, %v2245_v34 }
 0x4de   : > { %v2534_v42 = vadd.f32 %v3021_v30, %v2464_v49 }
 0x4e0   : > { %v2539_v10 = vmax.f32 %v2534_v42, 0.0 }
 0x4e2   : > { %3187 = vmatmul.mubr.f32.vlgmr.msra.gmra.mxu1 %v2539_v10 }
 0x57f   : > { %v3054_v50 = vpop.f32.mrf.mxu0 }
 0x581   : > { %v3055_v18 = vpop.f32.mrf.mxu0 }
 0x582   : > { %v3056_v24 = vadd.f32 %v3055_v18, %v3054_v50 }
 0x584   : > { %v2662_v52 = vadd.f32 %v3056_v24, %v2901_v51 }
 0x5a2   : > { %v2731_v53 = vpop.f32.mrf.mxu1 }
 0x5a3   : > { %v2732_v54 = vadd.f32 %v2731_v53, %v2662_v52 }
 0x5a4   : > { %v3188_v27 = vpop.f32.mrf.mxu1 }
 0x5a5   : > { %2735 = vst [vmem:[#allocation11] sm:$0xf] %v2732_v54 }
 0x5a6 PF: > { %s3953_s17 = sadd.s32 4294967295, %s3441_s25   ;;  %s3458_s27 = smov [#allocation11]  }
 0x5a7   : > { %p3878_p4 = scmp.eq.s32.totalorder %s3953_s17, 1  ;;  %s2745_s10 = sshll.u32 %s3458_s27, 4  ;;  %s2746_s10 = int_to_ptr.vmem [resolvable:$true] %s2745_s10 }
 0x5a8   : > { %s3359_s5 = scalar_lea.vmem %s2746_s10, 64  ;;  %p3366_p8 = scmp.lt.s32.totalorder %s2746_s10, %s2746_s10 }
 0x5a9   : > { %p3360_p2 = scmp.ne.s32.totalorder %s2746_s10, %s3359_s5  ;;  %p3367_p12 = scmp.lt.s32.totalorder %s3359_s5, %s3359_s5 }
 0x5ab   : > { %p3361_p6 = pnand %p3360_p2, %p3878_p4  ;;  %p3368_p13 = por %p3367_p12, %p3366_p8 }
 0x5ad   : > { %p3362_p5 = pneg %p3361_p6 }
 0x5af   : > { %p3369_p7 = pnand %p3368_p13, %p3362_p5 }
 0x5b1   : > { %3372 = shalt.err (!%p3369_p7)
}
 0x5b2   : > { %s3955_s15 = sld [smem:[#allocation22_spill]] }
 0x5b8   : > { %3200 = dma.vmem_to_hbm [thread:$0]  (%p3878_p4), %s2746_s10, 64, %s3955_s15, [#allocation7]  }
 0x5b9   : > { %3416 = dma.done.wait (%p3878_p4), [#allocation7], 64  }
 0x5ba   : > { %3418 = vsyncadd (%p3878_p4), [#allocation7], 4294967232 }
 0x5bb PF: > { %s32_s25 = sadd.s32 1, %s3441_s25   ;;  %s3956_s23 = sld [smem:[#allocation16_spill]] }
 0x5bc   : > { %p29_p9 = scmp.ge.s32.totalorder %s32_s25, 4   ;;  %s3957_s0 = sld [smem:[#allocation15_spill]] }
 0x5bd   : > { %s3958_s20 = smov %s3425_s21  ;;  %s3959_s21 = smov %s3429_s22 }
 0x5be   :  { %31 = sbr.rel (!%p29_p9) target bundleno = 13 (0xd), region = 183 }
 0x5c1   : > { %s3960_s22 = smov %s3956_s23  ;;  %s3961_s23 = smov %s3437_s24 }
 0x5c2   : > { %s3962_s24 = smov %s3957_s0 }
 0x5c3   :  { %2758 = vsyncpa [#allocation6], 1 }
 0x5c4   :  { %2760 = vsyncpa [#allocation6 + $0x1], 1 }
 0x5c5   :  { %2761 = vsyncpa [#allocation9], 1 }
 0x5c6   :  { %2762 = vsyncpa [#allocation7], 1 }
 0x5c7   :  { %2764 = vsyncpa [#allocation7 + $0x1], 1 }

</bundles_post_ra>
